<compile_context>
chip_gen: v5e
topology: v5e:2x2
jax: 0.10.0
libtpu: 0.0.40
codegen_flags: <defaults>
</compile_context>

<pallas_src>
import functools

import jax
import jax.numpy as jnp
import numpy as np
from jax.experimental import pallas as pl
from jax.experimental.pallas import tpu as pltpu

EPS = 1e-5      # nn.BatchNorm2d default eps
SLOPE = 0.01    # nn.LeakyReLU default negative_slope
LANE = 128      # pad output channels to lane granularity


# ----------------------------- small helpers -----------------------------

def _round_up(x, m):
    return (x + m - 1) // m * m


def _pad_axis(a, axis, size):
    if a.shape[axis] == size:
        return a
    cfg = [(0, 0)] * a.ndim
    cfg[axis] = (0, size - a.shape[axis])
    return jnp.pad(a, cfg)


def _cparams(n_parallel_axes):
    return pltpu.CompilerParams(
        dimension_semantics=("parallel",) * n_parallel_axes,
        vmem_limit_bytes=48 * 1024 * 1024)   # headroom under v7x's 64 MiB physical VMEM


def _pick_tp(p, c, itemsize, budget=2 << 20):
    """Largest row tile (multiple of 8, dividing p) whose block stays under a VMEM byte
    budget -- per-step overhead is ~0.35us, so bigger tiles are better up to the budget."""
    cap = max(8, budget // max(1, c * itemsize))
    if p <= cap:
        return p
    for t in range((min(cap, p) // 8) * 8, 7, -8):
        if p % t == 0:
            return t
    return p


# ----------------------------- Pallas kernels -----------------------------

def _conv3x3_mxu(xpad, w_ref, h, w, accumulate):
    """3x3 tap contraction on the MXU.

    xpad : (h+2, w+2, cin) f32 value with zero halo already applied.
    w_ref: (9*cin, cout_p) bf16 ref, rows ordered tap-major (kh, kw, ci).
    Returns (h*w, cout_p) f32.
    NOTE: the (h, w) -> h*w flatten is layout-trivial only when W is a multiple of 8.
    """
    cin = xpad.shape[-1]
    cout = w_ref.shape[-1]
    hw = h * w
    if accumulate:
        # Per-tap accumulation: no (hw, 9*cin) im2col buffer in VMEM (for cin >= 128).
        acc = jnp.zeros((hw, cout), jnp.float32)
        for kh in range(3):
            for kw in range(3):
                t = kh * 3 + kw
                win = xpad[kh:kh + h, kw:kw + w, :].reshape(hw, cin)
                acc = acc + jnp.dot(win.astype(jnp.bfloat16),
                                    w_ref[t * cin:(t + 1) * cin, :],
                                    preferred_element_type=jnp.float32)
        return acc
    # Tiny-cin path: fold the 9 taps into the contraction axis -> one MXU matmul.
    cols = [xpad[kh:kh + h, kw:kw + w, :].reshape(hw, cin)
            for kh in range(3) for kw in range(3)]
    patch = jnp.concatenate(cols, axis=1).astype(jnp.bfloat16)        # (hw, 9*cin)
    return jnp.dot(patch, w_ref[...], preferred_element_type=jnp.float32)


def _stats(y):
    """Per-channel [sum; sum-of-squares] of (hw, c) f32 -> (2, c) f32."""
    return jnp.concatenate([jnp.sum(y, axis=0, keepdims=True),
                            jnp.sum(y * y, axis=0, keepdims=True)], axis=0)


def _conv1_kernel(x_ref, w_ref, y_ref, st_ref, *, h, w, accumulate):
    """Conv1: padded bf16 image -> raw conv output (bf16) + fused BN statistics.

    x_ref : (1, h+2, w+2, cin) bf16   padded input image
    w_ref : (9*cin, cout_p)    bf16
    y_ref : (1, h, w, cout_p)  bf16   raw conv output (pre-BN; bias folded into BN)
    st_ref: (1, 2, cout_p)     f32    per-image [sum; sumsq]
    """
    xpad = x_ref[0].astype(jnp.float32)
    y = _conv3x3_mxu(xpad, w_ref, h, w, accumulate)                   # (hw, cout_p) f32
    y_ref[0] = y.reshape(h, w, y.shape[-1]).astype(y_ref.dtype)
    st_ref[0] = _stats(y)


def _conv2_kernel(y1_ref, sc_ref, sh_ref, w_ref, y_ref, st_ref, xpad_ref,
                  *, h, w, accumulate):
    """Conv2 with fused prologue: BN1 affine + LeakyReLU + zero-halo padding in a VMEM
    scratch, so the intermediate activation h1 never round-trips HBM.

    y1_ref  : (1, h, w, c)      bf16   raw conv1 output
    sc_ref  : (1, c)            f32    BN1 scale
    sh_ref  : (1, c)            f32    BN1 shift
    w_ref   : (9*c, cout_p)     bf16
    y_ref   : (1, h, w, cout_p) bf16
    st_ref  : (1, 2, cout_p)    f32
    xpad_ref: VMEM scratch (h+2, w+2, c) f32
    """
    c = y1_ref.shape[-1]
    sc = sc_ref[...].reshape(1, 1, c)
    sh = sh_ref[...].reshape(1, 1, c)
    h1 = y1_ref[0].astype(jnp.float32) * sc + sh
    h1 = jnp.where(h1 >= 0.0, h1, SLOPE * h1)
    xpad_ref[...] = jnp.zeros_like(xpad_ref)          # zero halo (cheap, per-step safe)
    xpad_ref[1:h + 1, 1:w + 1, :] = h1
    y = _conv3x3_mxu(xpad_ref[...], w_ref, h, w, accumulate)
    y_ref[0] = y.reshape(h, w, y.shape[-1]).astype(y_ref.dtype)
    st_ref[0] = _stats(y)


def _conv1x1_kernel(x_ref, w_ref, y_ref, st_ref):
    """Pointwise projection shortcut + fused BN statistics (bias folded into BN)."""
    y = jnp.dot(x_ref[0], w_ref[...], preferred_element_type=jnp.float32)
    y_ref[0] = y.astype(y_ref.dtype)
    st_ref[0] = _stats(y)


def _tail_kernel(y_ref, sc_ref, sh_ref, r_ref, rsc_ref, rsh_ref, o_ref):
    """Fused block tail: BN2 affine + shortcut affine (identity when the shortcut has no
    BN) + residual add + final LeakyReLU gate."""
    y = y_ref[0].astype(jnp.float32) * sc_ref[...] + sh_ref[...]
    r = r_ref[0].astype(jnp.float32) * rsc_ref[...] + rsh_ref[...]
    z = y + r
    o_ref[0] = jnp.where(z >= 0.0, z, SLOPE * z)


# ----------------------------- wrappers -----------------------------

def _conv3x3(x_nhwc, w_flat, stride):
    """3x3 conv (padding=1) + fused BN statistics.  One image per grid step.
    TODO(synk): haloed row-band tiling of H for large images (v7x 64 MiB VMEM budget)."""
    n, h, w, cin = x_nhwc.shape
    cp = w_flat.shape[-1]
    xp = jnp.pad(x_nhwc.astype(jnp.bfloat16), ((0, 0), (1, 1), (1, 1), (0, 0)))
    y, st = pl.pallas_call(
        functools.partial(_conv1_kernel, h=h, w=w, accumulate=cin >= 128),
        out_shape=(jax.ShapeDtypeStruct((n, h, w, cp), jnp.bfloat16),
                   jax.ShapeDtypeStruct((n, 2, cp), jnp.float32)),
        grid=(n,),
        in_specs=[pl.BlockSpec((1, h + 2, w + 2, cin), lambda i: (i, 0, 0, 0)),
                  pl.BlockSpec((9 * cin, cp), lambda i: (0, 0))],
        out_specs=(pl.BlockSpec((1, h, w, cp), lambda i: (i, 0, 0, 0)),
                   pl.BlockSpec((1, 2, cp), lambda i: (i, 0, 0))),
        compiler_params=_cparams(1),
    )(xp, w_flat)
    if stride == 1:
        return y, jnp.sum(st, axis=0), h, w
    # TODO(synk): fold strided-tap extraction + stats into the kernel (saves stride^2 MXU
    # FLOPs and two HBM passes); dense-conv + subsample fallback kept for correctness.
    ho, wo = (h - 1) // stride + 1, (w - 1) // stride + 1
    ys = y[:, ::stride, ::stride, :]
    yf = ys.astype(jnp.float32)
    stats = jnp.stack([jnp.sum(yf, axis=(0, 1, 2)), jnp.sum(yf * yf, axis=(0, 1, 2))], 0)
    return ys, stats, ho, wo


def _conv3x3_fused_bn_act(y1, sc1, sh1, w_flat):
    """Second 3x3 conv with BN1-apply + LeakyReLU fused into its prologue."""
    n, h, w, c = y1.shape
    cp = w_flat.shape[-1]
    y, st = pl.pallas_call(
        functools.partial(_conv2_kernel, h=h, w=w, accumulate=c >= 128),
        out_shape=(jax.ShapeDtypeStruct((n, h, w, cp), jnp.bfloat16),
                   jax.ShapeDtypeStruct((n, 2, cp), jnp.float32)),
        grid=(n,),
        in_specs=[pl.BlockSpec((1, h, w, c), lambda i: (i, 0, 0, 0)),
                  pl.BlockSpec((1, c), lambda i: (0, 0)),
                  pl.BlockSpec((1, c), lambda i: (0, 0)),
                  pl.BlockSpec((9 * c, cp), lambda i: (0, 0))],
        out_specs=(pl.BlockSpec((1, h, w, cp), lambda i: (i, 0, 0, 0)),
                   pl.BlockSpec((1, 2, cp), lambda i: (i, 0, 0))),
        scratch_shapes=[pltpu.VMEM((h + 2, w + 2, c), jnp.float32)],
        compiler_params=_cparams(1),
    )(y1, sc1.reshape(1, c), sh1.reshape(1, c), w_flat)
    return y, jnp.sum(st, axis=0)


def _conv1x1(x_npc, wmat):
    n, p, cin = x_npc.shape
    cp = wmat.shape[-1]
    y, st = pl.pallas_call(
        _conv1x1_kernel,
        out_shape=(jax.ShapeDtypeStruct((n, p, cp), jnp.bfloat16),
                   jax.ShapeDtypeStruct((n, 2, cp), jnp.float32)),
        grid=(n,),
        in_specs=[pl.BlockSpec((1, p, cin), lambda i: (i, 0, 0)),
                  pl.BlockSpec((cin, cp), lambda i: (0, 0))],
        out_specs=(pl.BlockSpec((1, p, cp), lambda i: (i, 0, 0)),
                   pl.BlockSpec((1, 2, cp), lambda i: (i, 0, 0))),
        compiler_params=_cparams(1),
    )(x_npc, wmat)
    return y, jnp.sum(st, axis=0)


def _bn_scale_shift(stats, gamma, beta, count):
    """O(C) BN finalization (wrapper glue): biased batch variance -> affine scale/shift.
    The conv bias is omitted upstream: BN with batch statistics cancels it exactly."""
    mean = stats[0] / count
    var = jnp.maximum(stats[1] / count - mean * mean, 0.0)   # guard one-pass cancellation
    scale = gamma * jax.lax.rsqrt(var + EPS)
    shift = beta - mean * scale
    return scale, shift


def _tail(y2, sc2, sh2, res, rsc, rsh):
    n, p, c = y2.shape
    tp = _pick_tp(p, c, itemsize=8)   # bf16 + bf16 inputs + f32 output per row
    return pl.pallas_call(
        _tail_kernel,
        out_shape=jax.ShapeDtypeStruct((n, p, c), jnp.float32),
        grid=(n, p // tp),
        in_specs=[pl.BlockSpec((1, tp, c), lambda i, j: (i, j, 0)),
                  pl.BlockSpec((1, c), lambda i, j: (0, 0)),
                  pl.BlockSpec((1, c), lambda i, j: (0, 0)),
                  pl.BlockSpec((1, tp, c), lambda i, j: (i, j, 0)),
                  pl.BlockSpec((1, c), lambda i, j: (0, 0)),
                  pl.BlockSpec((1, c), lambda i, j: (0, 0))],
        out_specs=pl.BlockSpec((1, tp, c), lambda i, j: (i, j, 0)),
        compiler_params=_cparams(2),
    )(y2, sc2.reshape(1, c), sh2.reshape(1, c), res, rsc.reshape(1, c), rsh.reshape(1, c))


def _avg_pool(x_nhwc, k):
    # TODO(synk): nn.AvgPool2d shortcut (only used for stride>1 blocks) kept as plain-JAX
    # glue; it is off the FLOP hot path.
    n, h, w, c = x_nhwc.shape
    xc = x_nhwc[:, :(h // k) * k, :(w // k) * k, :]
    return xc.reshape(n, h // k, k, w // k, k, c).mean(axis=(2, 4))


# ----------------------------- ResConv2d forward -----------------------------

def res_conv2d_forward(x_nchw, params, stride=1):
    x = jnp.transpose(x_nchw, (0, 2, 3, 1)).astype(jnp.float32)       # NCHW -> NHWC
    n, h, w, cin = x.shape
    cout = params["w1"].shape[-1]
    cp = _round_up(cout, LANE)                                        # lane-dense channels

    # Weight prep (glue): pad Cout (and conv2's Cin) to the lane boundary, flatten taps.
    # Conv biases are intentionally not used: BN batch statistics cancel them exactly.
    w1 = _pad_axis(params["w1"], 3, cp).reshape(9 * cin, cp).astype(jnp.bfloat16)
    w2 = _pad_axis(_pad_axis(params["w2"], 2, cp), 3, cp).reshape(9 * cp, cp).astype(jnp.bfloat16)
    g1, be1 = _pad_axis(params["g1"], 0, cp), _pad_axis(params["be1"], 0, cp)
    g2, be2 = _pad_axis(params["g2"], 0, cp), _pad_axis(params["be2"], 0, cp)

    # Main branch: conv1 (+stats) -> [BN1 + LeakyReLU fused into] conv2 (+stats).
    y1, st1, ho, wo = _conv3x3(x, w1, stride)
    cnt = n * ho * wo
    sc1, sh1 = _bn_scale_shift(st1, g1, be1, cnt)
    y2, st2 = _conv3x3_fused_bn_act(y1, sc1, sh1, w2)
    sc2, sh2 = _bn_scale_shift(st2, g2, be2, cnt)

    # Shortcut branch (mirrors the PyTorch branching); non-BN shortcuts use an identity
    # affine inside the fused tail kernel.  Lane-padded channels are exactly zero.
    p_out = ho * wo
    ones, zeros = jnp.ones((cp,), jnp.float32), jnp.zeros((cp,), jnp.float32)
    if cin == cout and stride == 1:
        res = _pad_axis(x, 3, cp).astype(jnp.bfloat16).reshape(n, p_out, cp)
        rsc, rsh = ones, zeros
    elif cin == cout:
        xs = _avg_pool(x, stride)
        res = _pad_axis(xs, 3, cp).astype(jnp.bfloat16).reshape(n, p_out, cp)
        rsc, rsh = ones, zeros
    else:
        xs = x if stride == 1 else _avg_pool(x, stride)
        ws = _pad_axis(params["ws"], 1, cp).astype(jnp.bfloat16)
        res, st_s = _conv1x1(xs.reshape(n, p_out, cin).astype(jnp.bfloat16), ws)
        rsc, rsh = _bn_scale_shift(st_s, _pad_axis(params["gs"], 0, cp),
                                   _pad_axis(params["bes"], 0, cp), cnt)

    out = _tail(y2.reshape(n, p_out, cp), sc2, sh2, res, rsc, rsh)    # (n, p, cp) f32
    out = out.reshape(n, ho, wo, cp)[..., :cout]                      # strip lane padding
    return jnp.transpose(out, (0, 3, 1, 2))                           # back to NCHW


def init_params(key, cin, cout):
    ks = jax.random.split(key, 12)
    p = {
        "w1": 0.2 * jax.random.normal(ks[0], (3, 3, cin, cout), jnp.float32),
        "b1": 0.1 * jax.random.normal(ks[1], (cout,), jnp.float32),
        "g1": 1.0 + 0.1 * jax.random.normal(ks[2], (cout,), jnp.float32),
        "be1": 0.1 * jax.random.normal(ks[3], (cout,), jnp.float32),
        "w2": 0.2 * jax.random.normal(ks[4], (3, 3, cout, cout), jnp.float32),
        "b2": 0.1 * jax.random.normal(ks[5], (cout,), jnp.float32),
        "g2": 1.0 + 0.1 * jax.random.normal(ks[6], (cout,), jnp.float32),
        "be2": 0.1 * jax.random.normal(ks[7], (cout,), jnp.float32),
    }
    if cin != cout:
        p["ws"] = 0.3 * jax.random.normal(ks[8], (cin, cout), jnp.float32)
        p["bs"] = 0.1 * jax.random.normal(ks[9], (cout,), jnp.float32)
        p["gs"] = 1.0 + 0.1 * jax.random.normal(ks[10], (cout,), jnp.float32)
        p["bes"] = 0.1 * jax.random.normal(ks[11], (cout,), jnp.float32)
    return p


# ----------------------------- plain-JAX reference -----------------------------

def ref_forward(x_nchw, params, stride):
    def conv(x, w, b, s, pad):
        y = jax.lax.conv_general_dilated(
            x, w, (s, s), [(pad, pad), (pad, pad)],
            dimension_numbers=("NHWC", "HWIO", "NHWC"))
        return y + b

    def bn(x, g, b):
        m = jnp.mean(x, axis=(0, 1, 2), keepdims=True)
        v = jnp.mean(jnp.square(x - m), axis=(0, 1, 2), keepdims=True)
        return (x - m) / jnp.sqrt(v + EPS) * g + b

    def lrelu(x):
        return jnp.where(x >= 0, x, SLOPE * x)

    x = jnp.transpose(x_nchw, (0, 2, 3, 1)).astype(jnp.float32)
    cin, cout = x.shape[-1], params["w1"].shape[-1]
    h1 = lrelu(bn(conv(x, params["w1"], params["b1"], stride, 1),
                  params["g1"], params["be1"]))
    h2 = bn(conv(h1, params["w2"], params["b2"], 1, 1), params["g2"], params["be2"])
    if cin == cout and stride == 1:
        sc = x
    elif cin == cout:
        sc = _avg_pool(x, stride)
    else:
        xs = x if stride == 1 else _avg_pool(x, stride)
        sc = bn(conv(xs, params["ws"].reshape(1, 1, cin, cout), params["bs"], 1, 0),
                params["gs"], params["bes"])
    return jnp.transpose(lrelu(h2 + sc), (0, 3, 1, 2))


if __name__ == "__main__":
    N, CIN, COUT, H, W, STRIDE = 2, 4, 8, 16, 16, 1   # cin != cout -> 1x1-conv+BN shortcut
    key = jax.random.PRNGKey(0)
    kx, kp = jax.random.split(key)
    x = jax.random.normal(kx, (N, CIN, H, W), jnp.float32)   # NCHW, PyTorch convention
    params = init_params(kp, CIN, COUT)

    out = jax.block_until_ready(res_conv2d_forward(x, params, STRIDE))
    ref = jax.block_until_ready(ref_forward(x, params, STRIDE))
    assert out.shape == (N, COUT, H // STRIDE, W // STRIDE)
    np.testing.assert_allclose(np.asarray(out), np.asarray(ref), rtol=5e-2, atol=5e-2)
    print("KERNEL_OK")
</pallas_src>

<mosaic_0001>
module attributes {stable_mosaic.version = 11 : i64} {
  func.func @_conv1_kernel(%arg0: i32, %arg1: memref<1x18x18x4xbf16, #tpu.memory_space<vmem>>, %arg2: memref<36x128xbf16, #tpu.memory_space<vmem>>, %arg3: memref<1x16x16x128xbf16, #tpu.memory_space<vmem>>, %arg4: memref<1x2x128xf32, #tpu.memory_space<vmem>>) attributes {dimension_semantics = [#tpu.dimension_semantics<parallel>], iteration_bounds = array<i64: 2>, scalar_prefetch = 0 : i64, scratch_operands = 0 : i64, tpu.core_type = #tpu.core_type<tc>, window_params = [{transform_indices = @transform_0, window_bounds = array<i64: 1, 18, 18, 4>}, {pipeline_mode = #tpu.pipeline_mode<synchronous>, transform_indices = @transform_1, window_bounds = array<i64: 36, 128>}, {transform_indices = @transform_2, window_bounds = array<i64: 1, 16, 16, 128>}, {transform_indices = @transform_3, window_bounds = array<i64: 1, 2, 128>}]} {
    %c0 = arith.constant 0 : index
    %c0_0 = arith.constant 0 : index
    %c0_1 = arith.constant 0 : index
    %c0_2 = arith.constant 0 : index
    %0 = vector.load %arg1[%c0, %c0_0, %c0_1, %c0_2] : memref<1x18x18x4xbf16, #tpu.memory_space<vmem>>, vector<1x18x18x4xbf16>
    %1 = vector.shape_cast %0 : vector<1x18x18x4xbf16> to vector<18x18x4xbf16>
    %2 = arith.extf %1 : vector<18x18x4xbf16> to vector<18x18x4xf32>
    %3 = vector.extract_strided_slice %2 {offsets = [0, 0, 0], sizes = [16, 16, 4], strides = [1, 1, 1]} : vector<18x18x4xf32> to vector<16x16x4xf32>
    %4 = vector.shape_cast %3 : vector<16x16x4xf32> to vector<256x4xf32>
    %5 = vector.extract_strided_slice %2 {offsets = [0, 1, 0], sizes = [16, 16, 4], strides = [1, 1, 1]} : vector<18x18x4xf32> to vector<16x16x4xf32>
    %6 = vector.shape_cast %5 : vector<16x16x4xf32> to vector<256x4xf32>
    %7 = vector.extract_strided_slice %2 {offsets = [0, 2, 0], sizes = [16, 16, 4], strides = [1, 1, 1]} : vector<18x18x4xf32> to vector<16x16x4xf32>
    %8 = vector.shape_cast %7 : vector<16x16x4xf32> to vector<256x4xf32>
    %9 = vector.extract_strided_slice %2 {offsets = [1, 0, 0], sizes = [16, 16, 4], strides = [1, 1, 1]} : vector<18x18x4xf32> to vector<16x16x4xf32>
    %10 = vector.shape_cast %9 : vector<16x16x4xf32> to vector<256x4xf32>
    %11 = vector.extract_strided_slice %2 {offsets = [1, 1, 0], sizes = [16, 16, 4], strides = [1, 1, 1]} : vector<18x18x4xf32> to vector<16x16x4xf32>
    %12 = vector.shape_cast %11 : vector<16x16x4xf32> to vector<256x4xf32>
    %13 = vector.extract_strided_slice %2 {offsets = [1, 2, 0], sizes = [16, 16, 4], strides = [1, 1, 1]} : vector<18x18x4xf32> to vector<16x16x4xf32>
    %14 = vector.shape_cast %13 : vector<16x16x4xf32> to vector<256x4xf32>
    %15 = vector.extract_strided_slice %2 {offsets = [2, 0, 0], sizes = [16, 16, 4], strides = [1, 1, 1]} : vector<18x18x4xf32> to vector<16x16x4xf32>
    %16 = vector.shape_cast %15 : vector<16x16x4xf32> to vector<256x4xf32>
    %17 = vector.extract_strided_slice %2 {offsets = [2, 1, 0], sizes = [16, 16, 4], strides = [1, 1, 1]} : vector<18x18x4xf32> to vector<16x16x4xf32>
    %18 = vector.shape_cast %17 : vector<16x16x4xf32> to vector<256x4xf32>
    %19 = vector.extract_strided_slice %2 {offsets = [2, 2, 0], sizes = [16, 16, 4], strides = [1, 1, 1]} : vector<18x18x4xf32> to vector<16x16x4xf32>
    %20 = vector.shape_cast %19 : vector<16x16x4xf32> to vector<256x4xf32>
    %21 = tpu.concatenate %4, %6, %8, %10, %12, %14, %16, %18, %20 in 1 : vector<256x4xf32>, vector<256x4xf32>, vector<256x4xf32>, vector<256x4xf32>, vector<256x4xf32>, vector<256x4xf32>, vector<256x4xf32>, vector<256x4xf32>, vector<256x4xf32> -> vector<256x36xf32>
    %22 = arith.truncf %21 : vector<256x36xf32> to vector<256x36xbf16>
    %c0_3 = arith.constant 0 : index
    %c0_4 = arith.constant 0 : index
    %23 = vector.load %arg2[%c0_3, %c0_4] : memref<36x128xbf16, #tpu.memory_space<vmem>>, vector<36x128xbf16>
    %cst = arith.constant dense<0.000000e+00> : vector<256x128xf32>
    %24 = tpu.matmul %22, %23, %cst {dimension_numbers = #tpu.dot_dimension_numbers<[1], [0], [0], [1], [0, 0, 1, 1], [], []>} : vector<256x36xbf16>, vector<36x128xbf16>, vector<256x128xf32> -> vector<256x128xf32>
    %25 = vector.shape_cast %24 : vector<256x128xf32> to vector<16x16x128xf32>
    %26 = arith.truncf %25 : vector<16x16x128xf32> to vector<16x16x128xbf16>
    %c0_5 = arith.constant 0 : index
    %c0_6 = arith.constant 0 : index
    %c0_7 = arith.constant 0 : index
    %c0_8 = arith.constant 0 : index
    %27 = vector.load %arg3[%c0_5, %c0_6, %c0_7, %c0_8] : memref<1x16x16x128xbf16, #tpu.memory_space<vmem>>, vector<1x16x16x128xbf16>
    %28 = vector.shape_cast %27 : vector<1x16x16x128xbf16> to vector<16x16x128xbf16>
    %29 = vector.shape_cast %26 : vector<16x16x128xbf16> to vector<1x16x16x128xbf16>
    tpu.vector_store %arg3[%c0_5, %c0_6, %c0_7, %c0_8], %29 {strides = array<i32>} : memref<1x16x16x128xbf16, #tpu.memory_space<vmem>>, vector<1x16x16x128xbf16>,
    %cst_9 = arith.constant dense<0.000000e+00> : vector<128xf32>
    %30 = vector.multi_reduction <add>, %24, %cst_9 [0] : vector<256x128xf32> to vector<128xf32>
    %31 = vector.shape_cast %30 : vector<128xf32> to vector<1x128xf32>
    %32 = arith.mulf %24, %24 : vector<256x128xf32>
    %cst_10 = arith.constant dense<0.000000e+00> : vector<128xf32>
    %33 = vector.multi_reduction <add>, %32, %cst_10 [0] : vector<256x128xf32> to vector<128xf32>
    %34 = vector.shape_cast %33 : vector<128xf32> to vector<1x128xf32>
    %35 = tpu.concatenate %31, %34 in 0 : vector<1x128xf32>, vector<1x128xf32> -> vector<2x128xf32>
    %c0_11 = arith.constant 0 : index
    %c0_12 = arith.constant 0 : index
    %c0_13 = arith.constant 0 : index
    %36 = vector.load %arg4[%c0_11, %c0_12, %c0_13] : memref<1x2x128xf32, #tpu.memory_space<vmem>>, vector<1x2x128xf32>
    %37 = vector.shape_cast %36 : vector<1x2x128xf32> to vector<2x128xf32>
    %38 = vector.shape_cast %35 : vector<2x128xf32> to vector<1x2x128xf32>
    tpu.vector_store %arg4[%c0_11, %c0_12, %c0_13], %38 {strides = array<i32>} : memref<1x2x128xf32, #tpu.memory_space<vmem>>, vector<1x2x128xf32>,
    return
  }
  func.func @transform_0(%arg0: i32) -> (i32, i32, i32, i32) {
    %c0_i32 = arith.constant 0 : i32
    %c0_i32_0 = arith.constant 0 : i32
    %c0_i32_1 = arith.constant 0 : i32
    %c0_i32_2 = arith.constant 0 : i32
    return %arg0, %c0_i32, %c0_i32_0, %c0_i32_1 : i32, i32, i32, i32
  }
  func.func @transform_1(%arg0: i32) -> (i32, i32) {
    %c0_i32 = arith.constant 0 : i32
    %c0_i32_0 = arith.constant 0 : i32
    %c0_i32_1 = arith.constant 0 : i32
    return %c0_i32, %c0_i32_0 : i32, i32
  }
  func.func @transform_2(%arg0: i32) -> (i32, i32, i32, i32) {
    %c0_i32 = arith.constant 0 : i32
    %c0_i32_0 = arith.constant 0 : i32
    %c0_i32_1 = arith.constant 0 : i32
    %c0_i32_2 = arith.constant 0 : i32
    return %arg0, %c0_i32, %c0_i32_0, %c0_i32_1 : i32, i32, i32, i32
  }
  func.func @transform_3(%arg0: i32) -> (i32, i32, i32) {
    %c0_i32 = arith.constant 0 : i32
    %c0_i32_0 = arith.constant 0 : i32
    %c0_i32_1 = arith.constant 0 : i32
    return %arg0, %c0_i32, %c0_i32_0 : i32, i32, i32
  }
}

</mosaic_0001>

<bundles_post_ra>
// kernel: tpu_custom_call.1
= control target key start
LH: loop header
LB: loop body
LE: loop exit
PB: predicated region body
PF: predicated region fallthrough
CT: control target
= control target key end

     0   :  { %9 = vsyncpa [#allocation3], 0  ;;  %s4635_s0 = inlined_call_operand.vmem [shape: bf16[2,18,18,4], index: 0, kind: input, shape index: {}]   ;;  %s4636_s1 = inlined_call_operand.vmem [shape: bf16[36,128], index: 1, kind: input, shape index: {}]   ;;  %s4637_s2 = inlined_call_operand.hbm [shape: bf16[2,16,16,128], index: 2, kind: output, shape index: {0}]   ;;  %s4638_s3 = inlined_call_operand.hbm [shape: f32[2,2,128], index: 3, kind: output, shape index: {1}]  }
   0x1   :  { %11 = vsyncpa [#allocation3 + $0x1], 0 }
   0x2   :  { %12 = vsyncpa [#allocation5], 0 }
   0x3   :  { %14 = vsyncpa [#allocation5 + $0x1], 0  ;;  %s3046_s12 = smov 0   ;;  %s3048_s13 = smov 0  }
   0x4   :  { %s3050_s14 = smov 0   ;;  %s3052_s15 = smov 0  }
   0x5 LB: > { %s3067_s16 = sadd.s32 4294967295, %s3015_s15   ;;  %s2038_s17 = sadd.s32 4294967294, %s3015_s15   ;;  %s3015_s15 = sphi %s3052_s15, %s4837_s15   ;;  %s3011_s14 = sphi %s3050_s14, %s4836_s14   ;;  %s3007_s13 = sphi %s3048_s13, %s4835_s13   ;;  %s3003_s12 = sphi %s3046_s12, %s4834_s12  }
   0x6   : > { %s3071_s18 = sadd.s32 1, %s3015_s15   ;;  %s74_s19 = sadd.s32 1, %s3011_s14 }
   0x7   : > { %s71_s20 = ssub.s32 %s3015_s15, %s3071_s18  ;;  %p84_p0 = scmp.ne.s32.totalorder %s3011_s14, %s3007_s13 }
   0x8   : > { %p72_p1 = scmp.eq.s32.totalorder %s71_s20, 0  ;;  %p85_p2 = scmp.eq.s32.totalorder %s3067_s16, 1 }
   0x9   : > { %p90_p3 = scmp.ne.s32.totalorder %s3007_s13, %s3003_s12  ;;  %p91_p4 = scmp.eq.s32.totalorder %s2038_s17, 1 }
   0xa   : > { %s3082_s21 = scalar_select %p72_p1, %s3011_s14, %s74_s19  }
   0xb   : > { %p3084_p5 = por %p85_p2, %p84_p0  ;;  %p3088_p6 = por %p91_p4, %p90_p3 }
   0xc   : > { %p2041_p7 = scmp.ge.s32.totalorder %s3015_s15, 1  ;;  %p146_p8 = scmp.lt.s32.totalorder %s3015_s15, 3 }
   0xe   : > { %p147_p9 = pnand %p2041_p7, %p146_p8 }
  0x10   : > { %150 = sbr.rel (%p147_p9) target bundleno = 663 (0x297), region = 28 }
  0x15   : > { %p175_p10 = scmp.lt.s32.totalorder %s3067_s16, 1  ;;  %vm337_vm0 = vcmask 1046528   ;;  %s3017_s29 = smov 4   ;;  %vm418_vm1 = vcmask 1045504   ;;  %vm1326_vm2 = vcmask 64512   ;;  %vm1293_vm3 = vcmask 31744  }
  0x16   : > { %s3018_s30 = smov 8   ;;  %s3019_s4 = smov 12   ;;  %vm1359_vm4 = vcmask 97280   ;;  %vm1392_vm5 = vcmask 130048   ;;  %vm1425_vm6 = vcmask 162816   ;;  %vm1642_vm7 = vcmask 1041408  }
  0x17   : > { %s176_s24 = scalar_select %p175_p10, %s3067_s16, 1  ;;  %vm1458_vm8 = vcmask 195584   ;;  %vm1491_vm9 = vcmask 228352   ;;  %vm1524_vm10 = vcmask 261120   ;;  %vm1593_vm11 = vcmask 293888  }
  0x18   : > { %s3020_s5 = smov 16   ;;  %s3021_s6 = smov 20  }
  0x19   : > { %s2227_s25 = smul.u32 216, %s176_s24  ;;  %s3022_s7 = smov 24  }
  0x1a   : > { %s3023_s8 = smov 32   ;;  %s3024_s9 = smov 28  }
  0x1b   : > { %s3099_s28 = scalar_lea.vmem %s4635_s0, %s2227_s25  ;;  %s4522_s25 = sand.u32 1, %s3007_s13  }
  0x1c   : > { %v2196_v0 = vld [vmem:[%s3099_s28 + $0x30] sm:$0xff]   ;;  %v3103_v1 = vld [vmem:[%s3099_s28 + $0x38] sm:$0x1]  ;;  %v3114_v7 = vld [vmem:[%s3099_s28 + $0x20] sm:$0x1]  ;;  %s2042_s26 = sshll.u32 %s4522_s25, 7 }
  0x1d   : > { %v2195_v2 = vld [vmem:[%s3099_s28 + $0x18] sm:$0xff]   ;;  %v3106_v3 = vunpack.c.l.bf16 %v2196_v0  ;;  %v3108_v4 = vunpack.c.h.bf16 %v2196_v0  ;;  %v4647_v5 = vunpack.c.l.bf16 %v3103_v1  ;;  %v2080_v8 = vld [vmem:[%s3099_s28] sm:$0xff]   ;;  %v3118_v9 = vld [vmem:[%s3099_s28 + $0x8] sm:$0x1]  ;;  %v4644_v11 = vunpack.c.l.bf16 %v3114_v7  ;;  %s4525_s27 = scalar_lea.vmem [#allocation2], %s2042_s26  ;;  %s2941_s19 = scalar_lea.hbm %s4637_s2, 256 }
  0x1e   : > { %v3111_v6 = vunpack.c.l.bf16 %v2195_v2  ;;  %v3120_v10 = vunpack.c.h.bf16 %v2195_v2  ;;  %v3123_v12 = vunpack.c.l.bf16 %v2080_v8  ;;  %v3125_v13 = vunpack.c.h.bf16 %v2080_v8  ;;  %v196_v14 = vld [vmem:[%s3099_s28 + $0x3c] sm:$0xff]   ;;  %v3139_v23 = vld [vmem:[%s3099_s28 + $0x44] sm:$0x1]  ;;  %v3154_v33 = vld [vmem:[%s3099_s28 + $0x2c] sm:$0x1] }
  0x1f   : > { %v358_v15 = vrot.slane %v3106_v3, 1  ;;  %v359_v16 = vrot.slane %v3108_v4, 1  ;;  %v361_v17 = vrot.slane %v4647_v5, 1  ;;  %v351_v20 = vrot.slane %v4644_v11, 1  ;;  %v190_v28 = vld [vmem:[%s3099_s28 + $0x24] sm:$0xff]   ;;  %v184_v38 = vld [vmem:[%s3099_s28 + $0xc] sm:$0xff]  }
  0x20   : > { %v348_v18 = vrot.slane %v3111_v6, 1  ;;  %v349_v19 = vrot.slane %v3120_v10, 1  ;;  %v4648_v21 = vunpack.c.l.bf16 %v3118_v9  ;;  %v338_v22 = vrot.slane %v3123_v12, 1  ;;  %v3172_v43 = vld [vmem:[%s3099_s28 + $0x14] sm:$0x1]  ;;  %v2198_v52 = vld [vmem:[%s3099_s28 + $0x60] sm:$0xff]  }
  0x21   : > { %v360_v24 = vsel %vm337_vm0, %v358_v15, %v359_v16  ;;  %v362_v25 = vsel %vm337_vm0, %v359_v16, %v361_v17  ;;  %v339_v26 = vrot.slane %v3125_v13, 1  ;;  %v3144_v27 = vunpack.c.l.bf16 %v196_v14  ;;  %v3194_v57 = vld [vmem:[%s3099_s28 + $0x68] sm:$0x1]  ;;  %v202_v58 = vld [vmem:[%s3099_s28 + $0x54] sm:$0xff]  }
  0x22   : > { %v3147_v29 = vpack.i.bf16 %v362_v25, %v360_v24  ;;  %v350_v30 = vsel %vm337_vm0, %v348_v18, %v349_v19  ;;  %v352_v31 = vsel %vm337_vm0, %v349_v19, %v351_v20  ;;  %v341_v32 = vrot.slane %v4648_v21, 1  ;;  %v2197_v19 = vld [vmem:[%s3099_s28 + $0x48] sm:$0xff]   ;;  %v2200_v5 = vld [vmem:[%s3099_s28 + $0x90] sm:$0xff]  }
  0x23   : > { %v3156_v34 = vpack.i.bf16 %v352_v31, %v350_v30  ;;  %v340_v35 = vsel %vm337_vm0, %v338_v22, %v339_v26  ;;  %v3159_v36 = vunpack.c.h.bf16 %v196_v14  ;;  %v4641_v37 = vunpack.c.l.bf16 %v3139_v23  ;;  %v3210_v14 = vld [vmem:[%s3099_s28 + $0x5c] sm:$0x1] }
  0x24   : > { %4713 = vst [vmem:[#allocation8_spill] sm:$0xff] %v3147_v29  ;;  %2302 = vrot.lane.b32.xlu2 %v3147_v29, %s3017_s29  ;;  %v342_v39 = vsel %vm337_vm0, %v339_v26, %v341_v32  ;;  %v363_v40 = vrot.slane %v3144_v27, 1  ;;  %v3167_v41 = vunpack.c.l.bf16 %v190_v28  ;;  %v3169_v42 = vunpack.c.h.bf16 %v190_v28  ;;  %v3225_v26 = vld [vmem:[%s3099_s28 + $0x50] sm:$0x1]  ;;  %v214_v28 = vld [vmem:[%s3099_s28 + $0x84] sm:$0xff]  }
  0x25   : > { %4714 = vst [vmem:[#allocation9_spill] sm:$0xff] %v3156_v34  ;;  %2292 = vrot.lane.b32.xlu1 %v3156_v34, %s3017_s29  ;;  %v2281_v44 = vpack.i.bf16 %v342_v39, %v340_v35  ;;  %v364_v45 = vrot.slane %v3159_v36, 1  ;;  %v366_v46 = vrot.slane %v4641_v37, 1  ;;  %v4645_v47 = vunpack.c.l.bf16 %v3154_v33  ;;  %v3342_v29 = vld [vmem:[%s3099_s28 + $0x98] sm:$0x1] }
  0x26   : > { %v353_v48 = vrot.slane %v3167_v41, 1  ;;  %v354_v49 = vrot.slane %v3169_v42, 1  ;;  %v3182_v50 = vunpack.c.l.bf16 %v184_v38  ;;  %v3184_v51 = vunpack.c.h.bf16 %v184_v38 }
  0x27   : > { %2282 = vrot.lane.b32.xlu0 %v2281_v44, %s3017_s29  ;;  %v365_v53 = vsel %vm337_vm0, %v363_v40, %v364_v45  ;;  %v367_v54 = vsel %vm337_vm0, %v364_v45, %v366_v46  ;;  %v356_v55 = vrot.slane %v4645_v47, 1  ;;  %v4649_v56 = vunpack.c.l.bf16 %v3172_v43  ;;  %v3245_v45 = vld [vmem:[%s3099_s28 + $0x8c] sm:$0x1]  ;;  %v3319_v47 = vld [vmem:[%s3099_s28 + $0xa4] sm:$0x1] }
  0x28   : > { %v3197_v59 = vpack.i.bf16 %v367_v54, %v365_v53  ;;  %v355_v60 = vsel %vm337_vm0, %v353_v48, %v354_v49  ;;  %v343_v61 = vrot.slane %v3182_v50, 1  ;;  %v344_v62 = vrot.slane %v3184_v51, 1  ;;  %v2199_v53 = vld [vmem:[%s3099_s28 + $0x78] sm:$0xff]  }
  0x29   : > { %v357_v63 = vsel %vm337_vm0, %v354_v49, %v356_v55  ;;  %v346_v0 = vrot.slane %v4649_v56, 1  ;;  %v3205_v2 = vunpack.c.l.bf16 %v2198_v52  ;;  %v3207_v8 = vunpack.c.h.bf16 %v2198_v52 }
  0x2a   : > { %4715 = vst [vmem:[#allocation10_spill] sm:$0xff] %v3197_v59  ;;  %v3212_v15 = vpack.i.bf16 %v357_v63, %v355_v60  ;;  %v345_v16 = vsel %vm337_vm0, %v343_v61, %v344_v62  ;;  %v4639_v17 = vunpack.c.l.bf16 %v3194_v57  ;;  %v3216_v18 = vunpack.c.l.bf16 %v202_v58 }
  0x2b   : > { %v347_v20 = vsel %vm337_vm0, %v344_v62, %v346_v0  ;;  %v378_v22 = vrot.slane %v3205_v2, 1  ;;  %v379_v24 = vrot.slane %v3207_v8, 1  ;;  %v3222_v25 = vunpack.c.h.bf16 %v202_v58 }
  0x2c   : > { %4716 = vst [vmem:[#allocation11_spill] sm:$0xff] %v3212_v15  ;;  %2307 = vrot.lane.b32.xlu2 %v3197_v59, %s3017_s29  ;;  %v3230_v30 = vpack.i.bf16 %v347_v20, %v345_v16  ;;  %v381_v31 = vrot.slane %v4639_v17, 1  ;;  %v4643_v32 = vunpack.c.l.bf16 %v3210_v14  ;;  %v373_v35 = vrot.slane %v3216_v18, 1  ;;  %v3268_v16 = vld [vmem:[%s3099_s28 + $0x80] sm:$0x1]  ;;  %v2201_v17 = vld [vmem:[%s3099_s28 + $0xa8] sm:$0xff]  }
  0x2d   : > { %2297 = vrot.lane.b32.xlu1 %v3212_v15, %s3017_s29  ;;  %v380_v38 = vsel %vm337_vm0, %v378_v22, %v379_v24  ;;  %v374_v39 = vrot.slane %v3222_v25, 1  ;;  %v3240_v40 = vunpack.c.l.bf16 %v2197_v19  ;;  %v3242_v44 = vunpack.c.h.bf16 %v2197_v19  ;;  %v208_v19 = vld [vmem:[%s3099_s28 + $0x6c] sm:$0xff]  }
  0x2e   : > { %4717 = vst [vmem:[#allocation12_spill] sm:$0xff] %v3230_v30  ;;  %v382_v46 = vsel %vm337_vm0, %v379_v24, %v381_v31  ;;  %v376_v48 = vrot.slane %v4643_v32, 1  ;;  %v4642_v49 = vunpack.c.l.bf16 %v3225_v26  ;;  %v3251_v52 = vunpack.c.l.bf16 %v214_v28 }
  0x2f   : > { %2287 = vrot.lane.b32.xlu0 %v3230_v30, %s3017_s29  ;;  %v3256_v54 = vpack.i.bf16 %v382_v46, %v380_v38  ;;  %v375_v55 = vsel %vm337_vm0, %v373_v35, %v374_v39  ;;  %v368_v58 = vrot.slane %v3240_v40, 1  ;;  %v369_v60 = vrot.slane %v3242_v44, 1  ;;  %v3284_v46 = vld [vmem:[%s3099_s28 + $0x74] sm:$0x1] }
  0x30   : > { %v377_v61 = vsel %vm337_vm0, %v374_v39, %v376_v48  ;;  %v371_v62 = vrot.slane %v4642_v49, 1  ;;  %v3264_v63 = vunpack.c.h.bf16 %v214_v28  ;;  %v4640_v0 = vunpack.c.l.bf16 %v3245_v45 }
  0x31   : > { %4718 = vst [vmem:[#allocation13_spill] sm:$0xff] %v3256_v54  ;;  %v3271_v20 = vpack.i.bf16 %v377_v61, %v375_v55  ;;  %v370_v22 = vsel %vm337_vm0, %v368_v58, %v369_v60  ;;  %v393_v24 = vrot.slane %v3251_v52, 1  ;;  %v3275_v31 = vunpack.c.l.bf16 %v2199_v53 }
  0x32   : > { %v372_v35 = vsel %vm337_vm0, %v369_v60, %v371_v62  ;;  %v394_v28 = vrot.slane %v3264_v63, 1  ;;  %v396_v38 = vrot.slane %v4640_v0, 1  ;;  %v3281_v39 = vunpack.c.h.bf16 %v2199_v53 }
  0x33   : > { %4719 = vst [vmem:[#allocation14_spill] sm:$0xff] %v3271_v20  ;;  %v3286_v48 = vpack.i.bf16 %v372_v35, %v370_v22  ;;  %v4646_v55 = vunpack.c.l.bf16 %v3268_v16  ;;  %v388_v58 = vrot.slane %v3275_v31, 1  ;;  %v3290_v61 = vunpack.c.l.bf16 %v208_v19  ;;  %v3301_v22 = vld [vmem:[%s3099_s28 + $0xb0] sm:$0x1]  ;;  %v220_v35 = vld [vmem:[%s3099_s28 + $0x9c] sm:$0xff]  }
  0x34   : > { %2322 = vrot.lane.b32.xlu2 %v3256_v54, %s3017_s29  ;;  %v395_v60 = vsel %vm337_vm0, %v393_v24, %v394_v28  ;;  %v397_v53 = vsel %vm337_vm0, %v394_v28, %v396_v38  ;;  %v389_v62 = vrot.slane %v3281_v39, 1  ;;  %v3298_v0 = vunpack.c.h.bf16 %v208_v19  ;;  %4721 = vst [vmem:[#allocation16_spill] sm:$0xff] %v3301_v22 }
  0x35   : > { %4720 = vst [vmem:[#allocation15_spill] sm:$0xff] %v3286_v48  ;;  %2317 = vrot.lane.b32.xlu1 %v3271_v20, %s3017_s29  ;;  %v3306_v37 = vpack.i.bf16 %v397_v53, %v395_v60  ;;  %v391_v49 = vrot.slane %v4646_v55, 1  ;;  %v4654_v24 = vunpack.c.l.bf16 %v3284_v46  ;;  %v383_v28 = vrot.slane %v3290_v61, 1 }
  0x36   : > { %v390_v38 = vsel %vm337_vm0, %v388_v58, %v389_v62  ;;  %v384_v19 = vrot.slane %v3298_v0, 1  ;;  %v3314_v32 = vunpack.c.l.bf16 %v2201_v17  ;;  %v3316_v11 = vunpack.c.h.bf16 %v2201_v17 }
  0x37   : > { %4722 = vst [vmem:[#allocation17_spill] sm:$0xff] %v3306_v37  ;;  %2312 = vrot.lane.b32.xlu0 %v3286_v48, %s3017_s29  ;;  %v392_v60 = vsel %vm337_vm0, %v389_v62, %v391_v49  ;;  %v386_v53 = vrot.slane %v4654_v24, 1  ;;  %v4659_v55 = vunpack.c.l.bf16 %v3301_v22  ;;  %v3327_v58 = vunpack.c.l.bf16 %v220_v35 }
  0x38   : > { %4723 = vst [vmem:[#allocation18_spill] sm:$0xff] %v3314_v32  ;;  %v3330_v21 = vpack.i.bf16 %v392_v60, %v390_v38  ;;  %v385_v17 = vsel %vm337_vm0, %v383_v28, %v384_v19  ;;  %v408_v56 = vrot.slane %v3314_v32, 1  ;;  %v409_v20 = vrot.slane %v3316_v11, 1 }
  0x39   : > { %4724 = vst [vmem:[#allocation19_spill] sm:$0xff] %v3316_v11  ;;  %v387_v54 = vsel %vm337_vm0, %v384_v19, %v386_v53  ;;  %v411_v49 = vrot.slane %v4659_v55, 1  ;;  %v3338_v62 = vunpack.c.h.bf16 %v220_v35  ;;  %v4662_v24 = vunpack.c.l.bf16 %v3319_v47 }
  0x3a   : > { %4725 = vst [vmem:[#allocation20_spill] sm:$0xff] %v3330_v21  ;;  %v403_v38 = vrot.slane %v3327_v58, 1  ;;  %v3345_v60 = vunpack.c.l.bf16 %v2200_v5  ;;  %v3347_v28 = vpack.i.bf16 %v387_v54, %v385_v17  ;;  %v3352_v53 = vunpack.c.h.bf16 %v2200_v5 }
  0x3b   : > { %v404_v59 = vrot.slane %v3338_v62, 1  ;;  %v406_v19 = vrot.slane %v4662_v24, 1  ;;  %v410_v35 = vsel %vm337_vm0, %v408_v56, %v409_v20  ;;  %v412_v55 = vsel %vm337_vm0, %v409_v20, %v411_v49  ;;  %v226_v24 = vld [vmem:[%s3099_s28 + $0xb4] sm:$0xff]   ;;  %v3373_v20 = vld [vmem:[%s3099_s28 + $0xbc] sm:$0x1] }
  0x3c   : > { %4726 = vst [vmem:[#allocation21_spill] sm:$0xff] %v3347_v28  ;;  %2337 = vrot.lane.b32.xlu2 %v3306_v37, %s3017_s29  ;;  %v4670_v48 = vunpack.c.l.bf16 %v3342_v29  ;;  %v398_v54 = vrot.slane %v3345_v60, 1  ;;  %v399_v17 = vrot.slane %v3352_v53, 1  ;;  %v3370_v56 = vpack.i.bf16 %v412_v55, %v410_v35 }
  0x3d   : > { %2332 = vrot.lane.b32.xlu1 %v3330_v21, %s3017_s29  ;;  %v405_v5 = vsel %vm337_vm0, %v403_v38, %v404_v59  ;;  %v407_v30 = vsel %vm337_vm0, %v404_v59, %v406_v19  ;;  %v424_v34 = vrot.slane %v3182_v50, 2  ;;  %v3378_v38 = vunpack.c.l.bf16 %v226_v24 }
  0x3e   : > { %v401_v37 = vrot.slane %v4670_v48, 1  ;;  %4727 = vst [vmem:[#allocation22_spill] sm:$0xff] %v3370_v56  ;;  %v400_v49 = vsel %vm337_vm0, %v398_v54, %v399_v17  ;;  %v3380_v59 = vpack.i.bf16 %v407_v30, %v405_v5  ;;  %v425_v19 = vrot.slane %v3184_v51, 2 }
  0x3f   : > { %2327 = vrot.lane.b32.xlu0 %v3347_v28, %s3017_s29  ;;  %4728 = vst [vmem:[#allocation23_spill] sm:$0xff] %v3378_v38  ;;  %v4730_v48 = vunpack.c.l.bf16 %v3172_v43  ;;  %v419_v55 = vrot.slane %v3123_v12, 2  ;;  %v420_v35 = vrot.slane %v3125_v13, 2  ;;  %v4731_v15 = vunpack.c.l.bf16 %v3118_v9 }
  0x40   : > { %v402_v21 = vsel %vm337_vm0, %v399_v17, %v401_v37  ;;  %4729 = vst [vmem:[#allocation24_spill] sm:$0xff] %v3380_v59  ;;  %v3389_v22 = vunpack.c.h.bf16 %v226_v24  ;;  %v4676_v37 = vunpack.c.l.bf16 %v3373_v20  ;;  %v413_v30 = vrot.slane %v3378_v38, 1 }
  0x41   : > { %v427_v28 = vrot.slane %v4730_v48, 2  ;;  %v422_v54 = vrot.slane %v4731_v15, 2  ;;  %v3392_v17 = vpack.i.bf16 %v402_v21, %v400_v49  ;;  %v426_v9 = vsel %vm418_vm1, %v424_v34, %v425_v19 }
  0x42   : > { %v414_v43 = vrot.slane %v3389_v22, 1  ;;  %v416_v48 = vrot.slane %v4676_v37, 1  ;;  %v421_v21 = vsel %vm418_vm1, %v419_v55, %v420_v35  ;;  %v440_v34 = vrot.slane %v3108_v4, 2 }
  0x43   : > { %4732 = vst [vmem:[#allocation25_spill] sm:$0xff] %v3392_v17  ;;  %v428_v15 = vsel %vm418_vm1, %v425_v19, %v427_v28  ;;  %v423_v24 = vsel %vm418_vm1, %v420_v35, %v422_v54  ;;  %v4733_v28 = vunpack.c.l.bf16 %v3103_v1  ;;  %v434_v55 = vrot.slane %v3167_v41, 2 }
  0x44   : > { %2352 = vrot.lane.b32.xlu2 %v3370_v56, %s3017_s29  ;;  %v3408_v5 = vpack.i.bf16 %v428_v15, %v426_v9  ;;  %v415_v49 = vsel %vm337_vm0, %v413_v30, %v414_v43  ;;  %v417_v37 = vsel %vm337_vm0, %v414_v43, %v416_v48  ;;  %v2361_v56 = vpack.i.bf16 %v423_v24, %v421_v21 }
  0x45   : > { %2347 = vrot.lane.b32.xlu1 %v3380_v59, %s3017_s29  ;;  %v439_v59 = vrot.slane %v3106_v3, 2  ;;  %v442_v19 = vrot.slane %v4733_v28, 2  ;;  %v435_v35 = vrot.slane %v3169_v42, 2  ;;  %v4734_v54 = vunpack.c.l.bf16 %v3154_v33 }
  0x46   : > { %v3420_v15 = vpack.i.bf16 %v417_v37, %v415_v49  ;;  %v429_v30 = vrot.slane %v3111_v6, 2  ;;  %v430_v43 = vrot.slane %v3120_v10, 2  ;;  %v4736_v1 = vunpack.c.l.bf16 %v3114_v7 }
  0x47   : > { %2342 = vrot.lane.b32.xlu0 %v3392_v17, %s3017_s29  ;;  %v437_v9 = vrot.slane %v4734_v54, 2  ;;  %v441_v21 = vsel %vm418_vm1, %v439_v59, %v440_v34  ;;  %v443_v33 = vsel %vm418_vm1, %v440_v34, %v442_v19  ;;  %v436_v37 = vsel %vm418_vm1, %v434_v55, %v435_v35 }
  0x48   : > { %4735 = vst [vmem:[#allocation26_spill] sm:$0xff] %v3420_v15  ;;  %v432_v48 = vrot.slane %v4736_v1, 2  ;;  %v3435_v49 = vpack.i.bf16 %v443_v33, %v441_v21  ;;  %v431_v28 = vsel %vm418_vm1, %v429_v30, %v430_v43  ;;  %v455_v59 = vrot.slane %v3222_v25, 2 }
  0x49   : > { %v438_v24 = vsel %vm418_vm1, %v435_v35, %v437_v9  ;;  %v4737_v34 = vunpack.c.l.bf16 %v3210_v14  ;;  %v449_v55 = vrot.slane %v3240_v40, 2  ;;  %v450_v35 = vrot.slane %v3242_v44, 2 }
  0x4a   : > { %v433_v7 = vsel %vm418_vm1, %v430_v43, %v432_v48  ;;  %v3439_v54 = vpack.i.bf16 %v438_v24, %v436_v37  ;;  %v4738_v9 = vunpack.c.l.bf16 %v3225_v26  ;;  %v444_v30 = vrot.slane %v3144_v27, 2 }
  0x4b   : > { %v457_v19 = vrot.slane %v4737_v34, 2  ;;  %v3449_v21 = vpack.i.bf16 %v433_v7, %v431_v28  ;;  %v445_v43 = vrot.slane %v3159_v36, 2  ;;  %v4739_v48 = vunpack.c.l.bf16 %v3139_v23 }
  0x4c   : > { %2367 = vrot.lane.b32.xlu2 %v3408_v5, %s3018_s30  ;;  %v452_v1 = vrot.slane %v4738_v9, 2  ;;  %v451_v37 = vsel %vm418_vm1, %v449_v55, %v450_v35  ;;  %v469_v9 = vrot.slane %v3275_v31, 2  ;;  %v464_v55 = vrot.slane %v3290_v61, 2 }
  0x4d   : > { %2362 = vrot.lane.b32.xlu1 %v2361_v56, %s3018_s30  ;;  %v454_v56 = vrot.slane %v3216_v18, 2  ;;  %v447_v14 = vrot.slane %v4739_v48, 2  ;;  %v458_v26 = vsel %vm418_vm1, %v455_v59, %v457_v19  ;;  %v446_v7 = vsel %vm418_vm1, %v444_v30, %v445_v43 }
  0x4e   : > { %v453_v24 = vsel %vm418_vm1, %v450_v35, %v452_v1  ;;  %v465_v35 = vrot.slane %v3298_v0, 2  ;;  %v4741_v1 = vunpack.c.l.bf16 %v3284_v46  ;;  %v459_v30 = vrot.slane %v3205_v2, 2 }
  0x4f   : > { %2357 = vrot.lane.b32.xlu0 %v3420_v15, %s3017_s29  ;;  %v456_v33 = vsel %vm418_vm1, %v454_v56, %v455_v59  ;;  %v448_v23 = vsel %vm418_vm1, %v445_v43, %v447_v14  ;;  %v3469_v34 = vpack.i.bf16 %v453_v24, %v451_v37  ;;  %v470_v56 = vrot.slane %v3281_v39, 2 }
  0x50   : > { %v3465_v28 = vpack.i.bf16 %v458_v26, %v456_v33  ;;  %v4740_v59 = vunpack.c.l.bf16 %v3268_v16  ;;  %v467_v48 = vrot.slane %v4741_v1, 2  ;;  %v3479_v33 = vpack.i.bf16 %v448_v23, %v446_v7 }
  0x51   : > { %v460_v43 = vrot.slane %v3207_v8, 2  ;;  %v4742_v14 = vunpack.c.l.bf16 %v3194_v57  ;;  %v471_v26 = vsel %vm418_vm1, %v469_v9, %v470_v56  ;;  %v466_v37 = vsel %vm418_vm1, %v464_v55, %v465_v35 }
  0x52   : > { %v472_v19 = vrot.slane %v4740_v59, 2  ;;  %v468_v24 = vsel %vm418_vm1, %v465_v35, %v467_v48  ;;  %v484_v1 = vrot.slane %v3327_v58, 2  ;;  %v485_v9 = vrot.slane %v3338_v62, 2 }
  0x53   : > { %v462_v16 = vrot.slane %v4742_v14, 2  ;;  %v461_v23 = vsel %vm418_vm1, %v459_v30, %v460_v43  ;;  %v3499_v59 = vpack.i.bf16 %v468_v24, %v466_v37  ;;  %v479_v55 = vrot.slane %v3345_v60, 2 }
  0x54   : > { %2382 = vrot.lane.b32.xlu2 %v3435_v49, %s3018_s30  ;;  %v473_v46 = vsel %vm418_vm1, %v470_v56, %v472_v19  ;;  %v4744_v56 = vunpack.c.l.bf16 %v3319_v47  ;;  %v480_v35 = vrot.slane %v3352_v53, 2  ;;  %v4745_v48 = vunpack.c.l.bf16 %v3342_v29 }
  0x55   : > { %2377 = vrot.lane.b32.xlu1 %v3439_v54, %s3018_s30  ;;  %v3495_v7 = vpack.i.bf16 %v473_v46, %v471_v26  ;;  %v463_v57 = vsel %vm418_vm1, %v460_v43, %v462_v16  ;;  %4743 = vst [vmem:[#allocation27_spill] sm:$0xff] %v3499_v59  ;;  %v474_v30 = vrot.slane %v3251_v52, 2  ;;  %v475_v43 = vrot.slane %v3264_v63, 2 }
  0x56   : > { %v487_v19 = vrot.slane %v4744_v56, 2  ;;  %v482_v14 = vrot.slane %v4745_v48, 2  ;;  %v3509_v26 = vpack.i.bf16 %v463_v57, %v461_v23  ;;  %v4746_v16 = vunpack.c.l.bf16 %v3245_v45 }
  0x57   : > { %2372 = vrot.lane.b32.xlu0 %v3449_v21, %s3018_s30  ;;  %v486_v46 = vsel %vm418_vm1, %v484_v1, %v485_v9  ;;  %v481_v37 = vsel %vm418_vm1, %v479_v55, %v480_v35  ;;  %v476_v57 = vsel %vm418_vm1, %v474_v30, %v475_v43  ;;  %v494_v48 = vrot.slane %v3378_v38, 2  ;;  %v4750_v30 = vld [vmem:[#allocation16_spill] sm:$0xff] }
  0x58   : > { %v477_v47 = vrot.slane %v4746_v16, 2  ;;  %v488_v29 = vsel %vm418_vm1, %v485_v9, %v487_v19  ;;  %v483_v24 = vsel %vm418_vm1, %v480_v35, %v482_v14  ;;  %v495_v1 = vrot.slane %v3389_v22, 2 }
  0x59   : > { %v3525_v23 = vpack.i.bf16 %v488_v29, %v486_v46  ;;  %v3529_v56 = vpack.i.bf16 %v483_v24, %v481_v37  ;;  %v4749_v9 = vunpack.c.l.bf16 %v3373_v20  ;;  %v489_v35 = vrot.slane %v3314_v32, 2 }
  0x5a   : > { %v478_v45 = vsel %vm418_vm1, %v475_v43, %v477_v47  ;;  %v490_v14 = vrot.slane %v3316_v11, 2  ;;  %v4751_v43 = vunpack.c.l.bf16 %v4750_v30  ;;  %v496_v47 = vsel %vm418_vm1, %v494_v48, %v495_v1 }
  0x5b   : > { %4747 = vst [vmem:[#allocation28_spill] sm:$0xff] %v3525_v23  ;;  %v497_v19 = vrot.slane %v4749_v9, 2  ;;  %v3535_v55 = vpack.i.bf16 %v478_v45, %v476_v57  ;;  %v2441_v46 = vpack.i.bf16 %v3184_v51, %v3182_v50  ;;  %v3564_v45 = vpack.i.bf16 %v3108_v4, %v3106_v3 }
  0x5c   : > { %2397 = vrot.lane.b32.xlu2 %v3465_v28, %s3018_s30  ;;  %4748 = vst [vmem:[#allocation29_spill] sm:$0xff] %v3529_v56  ;;  %v492_v16 = vrot.slane %v4751_v43, 2  ;;  %v491_v29 = vsel %vm418_vm1, %v489_v35, %v490_v14  ;;  %v3568_v48 = vpack.i.bf16 %v3169_v42, %v3167_v41  ;;  %v3588_v35 = vpack.i.bf16 %v3242_v44, %v3240_v40 }
  0x5d   : > { %2392 = vrot.lane.b32.xlu1 %v3469_v34, %s3018_s30  ;;  %v498_v20 = vsel %vm418_vm1, %v495_v1, %v497_v19  ;;  %4754 = vst [vmem:[#allocation31_spill] sm:$0xff] %v3564_v45  ;;  %v3572_v1 = vpack.i.bf16 %v3120_v10, %v3111_v6  ;;  %v3584_v19 = vpack.i.bf16 %v3222_v25, %v3216_v18 }
  0x5e   : > { %v493_v37 = vsel %vm418_vm1, %v490_v14, %v492_v16  ;;  %v3553_v24 = vpack.i.bf16 %v498_v20, %v496_v47  ;;  %4755 = vst [vmem:[#allocation32_spill] sm:$0xff] %v3568_v48  ;;  %v3592_v14 = vpack.i.bf16 %v3159_v36, %v3144_v27  ;;  %v3604_v43 = vpack.i.bf16 %v3281_v39, %v3275_v31 }
  0x5f   : > { %2387 = vrot.lane.b32.xlu0 %v3479_v33, %s3018_s30  ;;  %v3555_v57 = vpack.i.bf16 %v493_v37, %v491_v29  ;;  %4756 = vst [vmem:[#allocation33_spill] sm:$0xff] %v3572_v1  ;;  %v3608_v16 = vpack.i.bf16 %v3298_v0, %v3290_v61  ;;  %v3612_v47 = vpack.i.bf16 %v3207_v8, %v3205_v2  ;;  %v2202_v37 = vld [vmem:[%s3099_s28 + $0xc0] sm:$0xff]  }
  0x60   : > { %4752 = vst [vmem:[#allocation16_spill] sm:$0xff] %v3553_v24  ;;  %v3628_v29 = vpack.i.bf16 %v3352_v53, %v3345_v60 }
  0x61   : > { %4753 = vst [vmem:[#allocation30_spill] sm:$0xff] %v3555_v57 }
  0x62   : > { %4757 = vst [vmem:[#allocation34_spill] sm:$0xff] %v3584_v19 }
  0x63   : > { %4758 = vst [vmem:[#allocation35_spill] sm:$0xff] %v3588_v35 }
  0x64   : > { %2412 = vrot.lane.b32.xlu2 %v3495_v7, %s3018_s30  ;;  %4759 = vst [vmem:[#allocation36_spill] sm:$0xff] %v3592_v14 }
  0x65   : > { %2407 = vrot.lane.b32.xlu1 %v3499_v59, %s3018_s30  ;;  %4760 = vst [vmem:[#allocation37_spill] sm:$0xff] %v3604_v43 }
  0x66   : > { %4761 = vst [vmem:[#allocation38_spill] sm:$0xff] %v3608_v16 }
  0x67   : > { %2402 = vrot.lane.b32.xlu0 %v3509_v26, %s3018_s30  ;;  %4762 = vst [vmem:[#allocation39_spill] sm:$0xff] %v3612_v47 }
  0x68   : > { %4764 = vst [vmem:[#allocation41_spill] sm:$0xff] %v3628_v29 }
  0x6c   : > { %2427 = vrot.lane.b32.xlu2 %v3525_v23, %s3018_s30  ;;  %v4770_v23 = vld [vmem:[#allocation9_spill] sm:$0xff] }
  0x6d   : > { %2422 = vrot.lane.b32.xlu1 %v3529_v56, %s3018_s30  ;;  %v4769_v56 = vld [vmem:[#allocation11_spill] sm:$0xff] }
  0x6f   : > { %2417 = vrot.lane.b32.xlu0 %v3535_v55, %s3018_s30 }
  0x74   : > { %2442 = vrot.lane.b32.xlu2 %v2441_v46, %s3019_s4  ;;  %v3624_v46 = vpack.i.bf16 %v3338_v62, %v3327_v58 }
  0x75   : > { %2437 = vrot.lane.b32.xlu1 %v3553_v24, %s3018_s30 }
  0x76   : > { %4763 = vst [vmem:[#allocation40_spill] sm:$0xff] %v3624_v46 }
  0x77   : > { %2432 = vrot.lane.b32.xlu0 %v3555_v57, %s3018_s30 }
  0x7c   : > { %2457 = vrot.lane.b32.xlu2 %v3564_v45, %s3019_s4 }
  0x7d   : > { %2452 = vrot.lane.b32.xlu1 %v3568_v48, %s3019_s4 }
  0x7e   : > { %v3578_v9 = vpop.permute.xlu2 %2302 }
  0x7f   : > { %2447 = vrot.lane.b32.xlu0 %v3572_v1, %s3019_s4 }
  0x84   : > { %2472 = vrot.lane.b32.xlu2 %v3584_v19, %s3019_s4  ;;  %v3639_v19 = vunpack.c.h.bf16 %v2202_v37 }
  0x85   : > { %2467 = vrot.lane.b32.xlu1 %v3588_v35, %s3019_s4 }
  0x86   : > { %v3598_v30 = vpop.permute.xlu2 %2307 }
  0x87   : > { %2462 = vrot.lane.b32.xlu0 %v3592_v14, %s3019_s4  ;;  %v3633_v14 = vpack.i.bf16 %v3264_v63, %v3251_v52 }
  0x89   : > { %4765 = vst [vmem:[#allocation42_spill] sm:$0xff] %v3633_v14 }
  0x8c   : > { %2487 = vrot.lane.b32.xlu2 %v3604_v43, %s3019_s4 }
  0x8d   : > { %2482 = vrot.lane.b32.xlu1 %v3608_v16, %s3019_s4  ;;  %v3637_v16 = vunpack.c.l.bf16 %v2202_v37  ;;  %v3657_v37 = vpack.i.bf16 %v3389_v22, %v3378_v38  ;;  %v2305_v38 = vunpack.i.h.bf16 %v3578_v9 }
  0x8e   : > { %v3618_v20 = vpop.permute.xlu2 %2322 }
  0x8f   : > { %2477 = vrot.lane.b32.xlu0 %v3612_v47, %s3019_s4  ;;  %v3651_v43 = vpack.i.bf16 %v3639_v19, %v3637_v16  ;;  %4767 = vst [vmem:[#allocation44_spill] sm:$0xff] %v3657_v37 }
  0x91   : > { %4766 = vst [vmem:[#allocation43_spill] sm:$0xff] %v3651_v43 }
  0x94   : > { %2502 = vrot.lane.b32.xlu2 %v3624_v46, %s3019_s4  ;;  %v3661_v46 = vpack.i.bf16 %v3316_v11, %v3314_v32 }
  0x95   : > { %2497 = vrot.lane.b32.xlu1 %v3628_v29, %s3019_s4 }
  0x96   : > { %v3643_v47 = vpop.permute.xlu2 %2337  ;;  %4768 = vst [vmem:[#allocation45_spill] sm:$0xff] %v3661_v46 }
  0x97   : > { %2492 = vrot.lane.b32.xlu0 %v3633_v14, %s3019_s4  ;;  %v3647_v45 = vpop.permute.xlu1 %2292 }
  0x99   : > { %v3653_v35 = vpop.permute.xlu0 %2282 }
  0x9c   : > { %2517 = vrot.lane.b32.xlu2 %v3651_v43, %s3019_s4 }
  0x9d   : > { %2512 = vrot.lane.b32.xlu1 %v3657_v37, %s3019_s4  ;;  %v4771_v37 = vld [vmem:[#allocation12_spill] sm:$0xff] }
  0x9e   : > { %v3667_v29 = vpop.permute.xlu2 %2352 }
  0x9f   : > { %2507 = vrot.lane.b32.xlu0 %v3661_v46, %s3019_s4  ;;  %v3671_v14 = vpop.permute.xlu1 %2297 }
  0xa1   : > { %v2288_v48 = vpop.permute.xlu0 %2287 }
  0xa2   : > { %v2290_v24 = vunpack.i.h.bf16 %v2288_v48  ;;  %v2289_v1 = vunpack.i.l.bf16 %v2288_v48 }
  0xa4   : > { %2532 = vrot.lane.b32.xlu2 %v4769_v56, %s3020_s5  ;;  %v1297_v11 = vsel %vm1293_vm3, %v3184_v51, %v2290_v24  ;;  %v1296_v48 = vsel %vm1293_vm3, %v3182_v50, %v2289_v1  ;;  %v4775_v51 = vld [vmem:[#allocation10_spill] sm:$0xff]  ;;  %v4776_v50 = vld [vmem:[#allocation8_spill] sm:$0xff] }
  0xa5   : > { %2527 = vrot.lane.b32.xlu1 %v4770_v23, %s3020_s5 }
  0xa6   : > { %v2368_v43 = vpop.permute.xlu2 %2367 }
  0xa7   : > { %2522 = vrot.lane.b32.xlu0 %v4771_v37, %s3020_s5  ;;  %v2318_v57 = vpop.permute.xlu1 %2317  ;;  %v2370_v46 = vunpack.i.h.bf16 %v2368_v43  ;;  %v2369_v32 = vunpack.i.l.bf16 %v2368_v43  ;;  %v2304_v37 = vunpack.i.l.bf16 %v3578_v9  ;;  %v4774_v43 = vld [vmem:[#allocation15_spill] sm:$0xff] }
  0xa9   : > { %v3684_v56 = vsel %vm1326_vm2, %v1296_v48, %v2369_v32  ;;  %v3687_v23 = vsel %vm1326_vm2, %v1297_v11, %v2370_v46  ;;  %v3689_v59 = vpop.permute.xlu0 %2312  ;;  %v1303_v46 = vsel %vm1293_vm3, %v3108_v4, %v2305_v38  ;;  %v1302_v48 = vsel %vm1293_vm3, %v3106_v3, %v2304_v37  ;;  %v4780_v3 = vld [vmem:[#allocation14_spill] sm:$0xff] }
  0xaa   : > { %4772 = vst [vmem:[#allocation12_spill] sm:$0xff] %v3684_v56  ;;  %v2319_v56 = vunpack.i.l.bf16 %v2318_v57 }
  0xab   : > { %4773 = vst [vmem:[#allocation46_spill] sm:$0xff] %v3687_v23  ;;  %v2320_v23 = vunpack.i.h.bf16 %v2318_v57 }
  0xac   : > { %2547 = vrot.lane.b32.xlu2 %v4774_v43, %s3020_s5  ;;  %v1308_v57 = vsel %vm1293_vm3, %v3216_v18, %v2319_v56  ;;  %v4783_v18 = vld [vmem:[#allocation17_spill] sm:$0xff] }
  0xad   : > { %2542 = vrot.lane.b32.xlu1 %v4775_v51, %s3020_s5 }
  0xae   : > { %v2383_v24 = vpop.permute.xlu2 %2382 }
  0xaf   : > { %2537 = vrot.lane.b32.xlu0 %v4776_v50, %s3020_s5  ;;  %v2333_v32 = vpop.permute.xlu1 %2332  ;;  %v2385_v1 = vunpack.i.h.bf16 %v2383_v24  ;;  %v2384_v11 = vunpack.i.l.bf16 %v2383_v24  ;;  %v4778_v50 = vld [vmem:[#allocation21_spill] sm:$0xff] }
  0xb0   : > { %v4779_v24 = vld [vmem:[#allocation13_spill] sm:$0xff] }
  0xb1   : > { %v3704_v9 = vsel %vm1326_vm2, %v1303_v46, %v2385_v1  ;;  %v3707_v43 = vsel %vm1326_vm2, %v1302_v48, %v2384_v11  ;;  %v3709_v51 = vpop.permute.xlu0 %2327  ;;  %v1309_v11 = vsel %vm1293_vm3, %v3222_v25, %v2320_v23  ;;  %v2284_v25 = vunpack.i.l.bf16 %v3653_v35 }
  0xb2   : > { %4777 = vst [vmem:[#allocation47_spill] sm:$0xff] %v3707_v43  ;;  %v2334_v43 = vunpack.i.l.bf16 %v2333_v32 }
  0xb4   : > { %2562 = vrot.lane.b32.xlu2 %v4778_v50, %s3020_s5 }
  0xb5   : > { %2557 = vrot.lane.b32.xlu1 %v4779_v24, %s3020_s5  ;;  %v2285_v24 = vunpack.i.h.bf16 %v3653_v35  ;;  %v1314_v35 = vsel %vm1293_vm3, %v3275_v31, %v2334_v43  ;;  %v502_v31 = vrot.slane %v3637_v16, 1  ;;  %v503_v43 = vrot.slane %v3639_v19, 1 }
  0xb6   : > { %v2398_v4 = vpop.permute.xlu2 %2397 }
  0xb7   : > { %2552 = vrot.lane.b32.xlu0 %v4780_v3, %s3020_s5  ;;  %v2348_v38 = vpop.permute.xlu1 %2347  ;;  %v2400_v37 = vunpack.i.h.bf16 %v2398_v4  ;;  %v2399_v1 = vunpack.i.l.bf16 %v2398_v4  ;;  %v2335_v3 = vunpack.i.h.bf16 %v2333_v32  ;;  %v3733_v4 = vld [vmem:[%s3099_s28 + $0xc8] sm:$0x1]  ;;  %v1295_v23 = vsel %vm1293_vm3, %v3125_v13, %v2285_v24 }
  0xb8   : > { %v1294_v13 = vsel %vm1293_vm3, %v3123_v12, %v2284_v25  ;;  %v4787_v12 = vunpack.c.l.bf16 %v3733_v4 }
  0xb9   : > { %v3722_v46 = vsel %vm1326_vm2, %v1309_v11, %v2400_v37  ;;  %v3725_v48 = vsel %vm1326_vm2, %v1308_v57, %v2399_v1  ;;  %v3727_v50 = vpop.permute.xlu0 %2342  ;;  %v4784_v37 = vld [vmem:[#allocation20_spill] sm:$0xff]  ;;  %v2300_v57 = vunpack.i.h.bf16 %v3671_v14 }
  0xba   : > { %4781 = vst [vmem:[#allocation48_spill] sm:$0xff] %v3722_v46  ;;  %v505_v25 = vrot.slane %v4787_v12, 1 }
  0xbb   : > { %4782 = vst [vmem:[#allocation49_spill] sm:$0xff] %v3725_v48 }
  0xbc   : > { %2577 = vrot.lane.b32.xlu2 %v3392_v17, %s3020_s5  ;;  %v1315_v17 = vsel %vm1293_vm3, %v3281_v39, %v2335_v3 }
  0xbd   : > { %2572 = vrot.lane.b32.xlu1 %v4783_v18, %s3020_s5 }
  0xbe   : > { %v2413_v56 = vpop.permute.xlu2 %2412 }
  0xbf   : > { %2567 = vrot.lane.b32.xlu0 %v4784_v37, %s3020_s5  ;;  %v2415_v1 = vunpack.i.h.bf16 %v2413_v56  ;;  %v2414_v11 = vunpack.i.l.bf16 %v2413_v56  ;;  %v2363_v32 = vpop.permute.xlu1 %2362 }
  0xc0   : > { %v2365_v48 = vunpack.i.h.bf16 %v2363_v32  ;;  %v2364_v18 = vunpack.i.l.bf16 %v2363_v32  ;;  %v4788_v32 = vld [vmem:[#allocation22_spill] sm:$0xff] }
  0xc1   : > { %v3750_v24 = vsel %vm1326_vm2, %v1315_v17, %v2415_v1  ;;  %v3753_v37 = vsel %vm1326_vm2, %v1314_v35, %v2414_v11  ;;  %v3755_v56 = vpop.permute.xlu0 %2357  ;;  %v2350_v17 = vunpack.i.h.bf16 %v2348_v38  ;;  %v2349_v1 = vunpack.i.l.bf16 %v2348_v38 }
  0xc2   : > { %4785 = vst [vmem:[#allocation50_spill] sm:$0xff] %v3750_v24  ;;  %v1327_v39 = vsel %vm1326_vm2, %v1294_v13, %v2364_v18  ;;  %v1328_v3 = vsel %vm1326_vm2, %v1295_v23, %v2365_v48  ;;  %v2299_v11 = vunpack.i.l.bf16 %v3671_v14  ;;  %v2295_v18 = vunpack.i.h.bf16 %v3647_v45  ;;  %v4789_v13 = vld [vmem:[#allocation24_spill] sm:$0xff] }
  0xc3   : > { %4786 = vst [vmem:[#allocation51_spill] sm:$0xff] %v3753_v37  ;;  %v2294_v48 = vunpack.i.l.bf16 %v3647_v45  ;;  %v1301_v23 = vsel %vm1293_vm3, %v3169_v42, %v2300_v57  ;;  %v506_v14 = vsel %vm337_vm0, %v503_v43, %v505_v25  ;;  %v1320_v45 = vsel %vm1293_vm3, %v3327_v58, %v2349_v1 }
  0xc4   : > { %2592 = vrot.lane.b32.xlu2 %v3420_v15, %s3020_s5  ;;  %v504_v15 = vsel %vm337_vm0, %v502_v31, %v503_v43  ;;  %v1300_v42 = vsel %vm1293_vm3, %v3167_v41, %v2299_v11  ;;  %v1299_v58 = vsel %vm1293_vm3, %v3120_v10, %v2295_v18  ;;  %v2315_v1 = vunpack.i.h.bf16 %v3689_v59 }
  0xc5   : > { %2587 = vrot.lane.b32.xlu1 %v4788_v32, %s3020_s5  ;;  %v1321_v32 = vsel %vm1293_vm3, %v3338_v62, %v2350_v17  ;;  %v3795_v41 = vpack.i.bf16 %v506_v14, %v504_v15  ;;  %v2310_v10 = vunpack.i.h.bf16 %v3598_v30  ;;  %v2309_v15 = vunpack.i.l.bf16 %v3598_v30 }
  0xc6   : > { %v2428_v35 = vpop.permute.xlu2 %2427 }
  0xc7   : > { %2582 = vrot.lane.b32.xlu0 %v4789_v13, %s3020_s5  ;;  %v2430_v38 = vunpack.i.h.bf16 %v2428_v35  ;;  %v2429_v12 = vunpack.i.l.bf16 %v2428_v35  ;;  %v2378_v37 = vpop.permute.xlu1 %2377 }
  0xc8   : > { %v2380_v24 = vunpack.i.h.bf16 %v2378_v37  ;;  %v2379_v46 = vunpack.i.l.bf16 %v2378_v37  ;;  %v1298_v37 = vsel %vm1293_vm3, %v3111_v6, %v2294_v48 }
  0xc9   : > { %v3784_v57 = vsel %vm1326_vm2, %v1321_v32, %v2430_v38  ;;  %v3787_v35 = vsel %vm1326_vm2, %v1320_v45, %v2429_v12  ;;  %v2373_v31 = vpop.permute.xlu0 %2372 }
  0xca   : > { %v1334_v43 = vsel %vm1326_vm2, %v1301_v23, %v2380_v24  ;;  %v1333_v25 = vsel %vm1326_vm2, %v1300_v42, %v2379_v46  ;;  %v2375_v62 = vunpack.i.h.bf16 %v2373_v31  ;;  %v2374_v17 = vunpack.i.l.bf16 %v2373_v31 }
  0xcb   : > { %v2314_v46 = vunpack.i.l.bf16 %v3689_v59  ;;  %v1307_v23 = vsel %vm1293_vm3, %v3242_v44, %v2315_v1  ;;  %v1305_v44 = vsel %vm1293_vm3, %v3159_v36, %v2310_v10 }
  0xcc   : > { %v3799_v11 = vsel %vm1326_vm2, %v1299_v58, %v2375_v62  ;;  %v3802_v32 = vsel %vm1326_vm2, %v1298_v37, %v2374_v17  ;;  %2607 = vrot.lane.b32.xlu2 %v3449_v21, %s3021_s6  ;;  %v1304_v17 = vsel %vm1293_vm3, %v3144_v27, %v2309_v15  ;;  %v2329_v58 = vunpack.i.l.bf16 %v3709_v51 }
  0xcd   : > { %2602 = vrot.lane.b32.xlu1 %v3408_v5, %s3021_s6  ;;  %v1306_v5 = vsel %vm1293_vm3, %v3240_v40, %v2314_v46  ;;  %v2330_v40 = vunpack.i.h.bf16 %v3709_v51  ;;  %v2325_v37 = vunpack.i.h.bf16 %v3618_v20  ;;  %v2324_v27 = vunpack.i.l.bf16 %v3618_v20 }
  0xce   : > { %v2443_v6 = vpop.permute.xlu2 %2442  ;;  %v1312_v51 = vsel %vm1293_vm3, %v3290_v61, %v2329_v58  ;;  %v2345_v61 = vunpack.i.h.bf16 %v3727_v50 }
  0xcf   : > { %2597 = vrot.lane.b32.xlu0 %v3795_v41, %s3020_s5  ;;  %v2445_v24 = vunpack.i.h.bf16 %v2443_v6  ;;  %v2444_v18 = vunpack.i.l.bf16 %v2443_v6  ;;  %v2393_v48 = vpop.permute.xlu1 %2392  ;;  %v1313_v10 = vsel %vm1293_vm3, %v3298_v0, %v2330_v40  ;;  %v1311_v0 = vsel %vm1293_vm3, %v3207_v8, %v2325_v37 }
  0xd0   : > { %v2395_v38 = vunpack.i.h.bf16 %v2393_v48  ;;  %v2394_v59 = vunpack.i.l.bf16 %v2393_v48  ;;  %v2340_v8 = vunpack.i.h.bf16 %v3643_v47 }
  0xd1   : > { %v3818_v12 = vsel %vm1359_vm4, %v1327_v39, %v2444_v18  ;;  %v3821_v14 = vsel %vm1359_vm4, %v1328_v3, %v2445_v24  ;;  %v2388_v30 = vpop.permute.xlu0 %2387 }
  0xd2   : > { %v1339_v45 = vsel %vm1326_vm2, %v1306_v5, %v2394_v59  ;;  %v1340_v42 = vsel %vm1326_vm2, %v1307_v23, %v2395_v38  ;;  %v2390_v31 = vunpack.i.h.bf16 %v2388_v30  ;;  %v2389_v62 = vunpack.i.l.bf16 %v2388_v30 }
  0xd3   : > { %v1310_v30 = vsel %vm1293_vm3, %v3205_v2, %v2324_v27  ;;  %v2339_v2 = vunpack.i.l.bf16 %v3643_v47  ;;  %v2360_v27 = vunpack.i.h.bf16 %v3755_v56 }
  0xd4   : > { %v3831_v39 = vsel %vm1326_vm2, %v1305_v44, %v2390_v31  ;;  %v3834_v3 = vsel %vm1326_vm2, %v1304_v17, %v2389_v62  ;;  %2622 = vrot.lane.b32.xlu2 %v3479_v33, %s3021_s6 }
  0xd5   : > { %2617 = vrot.lane.b32.xlu1 %v3435_v49, %s3021_s6 }
  0xd6   : > { %v2458_v36 = vpop.permute.xlu2 %2457 }
  0xd7   : > { %2612 = vrot.lane.b32.xlu0 %v3439_v54, %s3021_s6  ;;  %v2460_v1 = vunpack.i.h.bf16 %v2458_v36  ;;  %v2459_v46 = vunpack.i.l.bf16 %v2458_v36  ;;  %v2408_v6 = vpop.permute.xlu1 %2407 }
  0xd8   : > { %v2410_v15 = vunpack.i.h.bf16 %v2408_v6  ;;  %v2409_v24 = vunpack.i.l.bf16 %v2408_v6 }
  0xd9   : > { %v3850_v18 = vsel %vm1359_vm4, %v1333_v25, %v2459_v46  ;;  %v3853_v48 = vsel %vm1359_vm4, %v1334_v43, %v2460_v1  ;;  %v2403_v20 = vpop.permute.xlu0 %2402  ;;  %v2344_v25 = vunpack.i.l.bf16 %v3727_v50  ;;  %v1319_v50 = vsel %vm1293_vm3, %v3352_v53, %v2345_v61 }
  0xda   : > { %v1345_v23 = vsel %vm1326_vm2, %v1312_v51, %v2409_v24  ;;  %v1346_v38 = vsel %vm1326_vm2, %v1313_v10, %v2410_v15  ;;  %v2405_v59 = vunpack.i.h.bf16 %v2403_v20  ;;  %v2404_v5 = vunpack.i.l.bf16 %v2403_v20 }
  0xdb   : > { %v1318_v58 = vsel %vm1293_vm3, %v3345_v60, %v2344_v25  ;;  %v1317_v60 = vsel %vm1293_vm3, %v3264_v63, %v2340_v8  ;;  %v1316_v24 = vsel %vm1293_vm3, %v3251_v52, %v2339_v2  ;;  %v2359_v51 = vunpack.i.l.bf16 %v3755_v56 }
  0xdc   : > { %v3864_v43 = vsel %vm1326_vm2, %v1311_v0, %v2405_v59  ;;  %v3867_v31 = vsel %vm1326_vm2, %v1310_v30, %v2404_v5  ;;  %2637 = vrot.lane.b32.xlu2 %v3509_v26, %s3021_s6  ;;  %v2355_v20 = vunpack.i.h.bf16 %v3667_v29  ;;  %v2354_v63 = vunpack.i.l.bf16 %v3667_v29  ;;  %v4790_v59 = vld [vmem:[#allocation23_spill] sm:$0xff] }
  0xdd   : > { %2632 = vrot.lane.b32.xlu1 %v3465_v28, %s3021_s6  ;;  %v1325_v52 = vsel %vm1293_vm3, %v3389_v22, %v2360_v27  ;;  %v1324_v5 = vsel %vm1293_vm3, %v4790_v59, %v2359_v51  ;;  %v4791_v0 = vld [vmem:[#allocation27_spill] sm:$0xff]  ;;  %v507_v2 = vrot.slane %v3637_v16, 2 }
  0xde   : > { %v2473_v62 = vpop.permute.xlu2 %2472 }
  0xdf   : > { %2627 = vrot.lane.b32.xlu0 %v3469_v34, %s3021_s6  ;;  %v2475_v44 = vunpack.i.h.bf16 %v2473_v62  ;;  %v2474_v17 = vunpack.i.l.bf16 %v2473_v62  ;;  %v2423_v40 = vpop.permute.xlu1 %2422 }
  0xe0   : > { %v2425_v36 = vunpack.i.h.bf16 %v2423_v40  ;;  %v2424_v37 = vunpack.i.l.bf16 %v2423_v40 }
  0xe1   : > { %v3883_v1 = vsel %vm1359_vm4, %v1339_v45, %v2474_v17  ;;  %v3886_v47 = vsel %vm1359_vm4, %v1340_v42, %v2475_v44  ;;  %v2418_v53 = vpop.permute.xlu0 %2417  ;;  %v508_v44 = vrot.slane %v3639_v19, 2  ;;  %v4792_v17 = vunpack.c.l.bf16 %v3733_v4  ;;  %v4795_v4 = vld [vmem:[#allocation30_spill] sm:$0xff] }
  0xe2   : > { %v1351_v46 = vsel %vm1326_vm2, %v1318_v58, %v2424_v37  ;;  %v1352_v6 = vsel %vm1326_vm2, %v1319_v50, %v2425_v36  ;;  %v2420_v10 = vunpack.i.h.bf16 %v2418_v53  ;;  %v2419_v15 = vunpack.i.l.bf16 %v2418_v53  ;;  %v4793_v53 = vld [vmem:[#allocation19_spill] sm:$0xff] }
  0xe3   : > { %v510_v40 = vrot.slane %v4792_v17, 2  ;;  %v1323_v16 = vsel %vm1293_vm3, %v4793_v53, %v2355_v20  ;;  %v4797_v20 = vld [vmem:[#allocation29_spill] sm:$0xff]  ;;  %v4798_v17 = vld [vmem:[#allocation12_spill] sm:$0xff] }
  0xe4   : > { %v3896_v45 = vsel %vm1326_vm2, %v1317_v60, %v2420_v10  ;;  %v3899_v42 = vsel %vm1326_vm2, %v1316_v24, %v2419_v15  ;;  %2652 = vrot.lane.b32.xlu2 %v3535_v55, %s3021_s6  ;;  %v4796_v15 = vld [vmem:[#allocation28_spill] sm:$0xff]  ;;  %v509_v24 = vsel %vm418_vm1, %v507_v2, %v508_v44 }
  0xe5   : > { %2647 = vrot.lane.b32.xlu1 %v3495_v7, %s3021_s6  ;;  %v511_v51 = vsel %vm418_vm1, %v508_v44, %v510_v40 }
  0xe6   : > { %v2488_v56 = vpop.permute.xlu2 %2487 }
  0xe7   : > { %2642 = vrot.lane.b32.xlu0 %v4791_v0, %s3021_s6  ;;  %v2490_v30 = vunpack.i.h.bf16 %v2488_v56  ;;  %v2489_v61 = vunpack.i.l.bf16 %v2488_v56  ;;  %v2438_v25 = vpop.permute.xlu1 %2437 }
  0xe8   : > { %v2440_v8 = vunpack.i.h.bf16 %v2438_v25  ;;  %v2439_v62 = vunpack.i.l.bf16 %v2438_v25 }
  0xe9   : > { %v3915_v50 = vsel %vm1359_vm4, %v1345_v23, %v2489_v61  ;;  %v3918_v29 = vsel %vm1359_vm4, %v1346_v38, %v2490_v30  ;;  %v2433_v22 = vpop.permute.xlu0 %2432  ;;  %v4794_v23 = vld [vmem:[#allocation18_spill] sm:$0xff] }
  0xea   : > { %v1357_v58 = vsel %vm1326_vm2, %v1324_v5, %v2439_v62  ;;  %v1358_v36 = vsel %vm1326_vm2, %v1325_v52, %v2440_v8  ;;  %v2435_v37 = vunpack.i.h.bf16 %v2433_v22  ;;  %v2434_v27 = vunpack.i.l.bf16 %v2433_v22 }
  0xeb   : > { %v1322_v10 = vsel %vm1293_vm3, %v4794_v23, %v2354_v63  ;;  %v3949_v8 = vpack.i.bf16 %v511_v51, %v509_v24 }
  0xec   : > { %v3930_v38 = vsel %vm1326_vm2, %v1323_v16, %v2435_v37  ;;  %v3933_v19 = vsel %vm1326_vm2, %v1322_v10, %v2434_v27  ;;  %2667 = vrot.lane.b32.xlu2 %v4795_v4, %s3021_s6 }
  0xed   : > { %2662 = vrot.lane.b32.xlu1 %v4796_v15, %s3021_s6 }
  0xee   : > { %v2503_v60 = vpop.permute.xlu2 %2502 }
  0xef   : > { %2657 = vrot.lane.b32.xlu0 %v4797_v20, %s3021_s6  ;;  %v2505_v63 = vunpack.i.h.bf16 %v2503_v60  ;;  %v2504_v52 = vunpack.i.l.bf16 %v2503_v60  ;;  %v2453_v56 = vpop.permute.xlu1 %2452 }
  0xf0   : > { %v2455_v59 = vunpack.i.h.bf16 %v2453_v56  ;;  %v2454_v5 = vunpack.i.l.bf16 %v2453_v56 }
  0xf1   : > { %v3944_v30 = vsel %vm1359_vm4, %v1351_v46, %v2504_v52  ;;  %v3947_v61 = vsel %vm1359_vm4, %v1352_v6, %v2505_v63  ;;  %v2448_v25 = vpop.permute.xlu0 %2447  ;;  %v4799_v46 = vld [vmem:[#allocation46_spill] sm:$0xff]  ;;  %v4800_v6 = vld [vmem:[#allocation33_spill] sm:$0xff] }
  0xf2   : > { %v1364_v62 = vsel %vm1359_vm4, %v3802_v32, %v2454_v5  ;;  %v1365_v2 = vsel %vm1359_vm4, %v3799_v11, %v2455_v59  ;;  %v2450_v22 = vunpack.i.h.bf16 %v2448_v25  ;;  %v2449_v44 = vunpack.i.l.bf16 %v2448_v25  ;;  %v4801_v11 = vld [vmem:[#allocation16_spill] sm:$0xff]  ;;  %v4802_v25 = vld [vmem:[#allocation47_spill] sm:$0xff] }
  0xf4   : > { %v3957_v40 = vsel %vm1359_vm4, %v4798_v17, %v2449_v44  ;;  %v3961_v37 = vsel %vm1359_vm4, %v4799_v46, %v2450_v22  ;;  %2682 = vrot.lane.b32.xlu2 %v4800_v6, %s3022_s7 }
  0xf5   : > { %2677 = vrot.lane.b32.xlu1 %v3949_v8, %s3021_s6 }
  0xf6   : > { %v2518_v32 = vpop.permute.xlu2 %2517 }
  0xf7   : > { %2672 = vrot.lane.b32.xlu0 %v4801_v11, %s3021_s6  ;;  %v2520_v27 = vunpack.i.h.bf16 %v2518_v32  ;;  %v2519_v53 = vunpack.i.l.bf16 %v2518_v32  ;;  %v2468_v16 = vpop.permute.xlu1 %2467  ;;  %s1926_s6 = sshll.u32 %s4525_s27, 4  ;;  %s1927_s6 = int_to_ptr.vmem [resolvable:$true] %s1926_s6 }
  0xf8   : > { %v2470_v23 = vunpack.i.h.bf16 %v2468_v16  ;;  %v2469_v10 = vunpack.i.l.bf16 %v2468_v16 }
  0xf9   : > { %v3970_v60 = vsel %vm1359_vm4, %v1357_v58, %v2519_v53  ;;  %v3973_v24 = vsel %vm1359_vm4, %v1358_v36, %v2520_v27  ;;  %v2463_v51 = vpop.permute.xlu0 %2462  ;;  %v4803_v36 = vld [vmem:[#allocation32_spill] sm:$0xff] }
  0xfa   : > { %v1370_v63 = vsel %vm1359_vm4, %v3834_v3, %v2469_v10  ;;  %v1371_v52 = vsel %vm1359_vm4, %v3831_v39, %v2470_v23  ;;  %v2465_v56 = vunpack.i.h.bf16 %v2463_v51  ;;  %v2464_v59 = vunpack.i.l.bf16 %v2463_v51  ;;  %v4804_v39 = vld [vmem:[#allocation9_spill] sm:$0xff]  ;;  %v4805_v10 = vld [vmem:[#allocation48_spill] sm:$0xff] }
  0xfc   : > { %v3981_v5 = vsel %vm1359_vm4, %v3704_v9, %v2465_v56  ;;  %v3985_v58 = vsel %vm1359_vm4, %v4802_v25, %v2464_v59  ;;  %2697 = vrot.lane.b32.xlu2 %v4803_v36, %s3022_s7  ;;  %v4806_v56 = vld [vmem:[#allocation49_spill] sm:$0xff]  ;;  %v4808_v59 = vld [vmem:[#allocation11_spill] sm:$0xff] }
  0xfd   : > { %2692 = vrot.lane.b32.xlu1 %v3449_v21, %s3023_s8  ;;  %v4809_v25 = vld [vmem:[#allocation35_spill] sm:$0xff] }
  0xfe   : > { %v2533_v3 = vpop.permute.xlu2 %2532 }
  0xff   : > { %2687 = vrot.lane.b32.xlu0 %v4804_v39, %s3024_s9  ;;  %v2535_v22 = vunpack.i.h.bf16 %v2533_v3  ;;  %v2534_v9 = vunpack.i.l.bf16 %v2533_v3  ;;  %v2483_v44 = vpop.permute.xlu1 %2482 }
 0x100   : > { %v2485_v17 = vunpack.i.h.bf16 %v2483_v44  ;;  %v2484_v46 = vunpack.i.l.bf16 %v2483_v44 }
 0x101   : > { %v3994_v6 = vsel %vm1392_vm5, %v1364_v62, %v2534_v9  ;;  %v3997_v32 = vsel %vm1392_vm5, %v1365_v2, %v2535_v22  ;;  %v2478_v27 = vpop.permute.xlu0 %2477  ;;  %v4807_v2 = vld [vmem:[#allocation15_spill] sm:$0xff] }
 0x102   : > { %v1376_v21 = vsel %vm1359_vm4, %v3867_v31, %v2484_v46  ;;  %v1377_v53 = vsel %vm1359_vm4, %v3864_v43, %v2485_v17  ;;  %v2480_v16 = vunpack.i.h.bf16 %v2478_v27  ;;  %v2479_v23 = vunpack.i.l.bf16 %v2478_v27 }
 0x104   : > { %v4005_v51 = vsel %vm1359_vm4, %v4805_v10, %v2480_v16  ;;  %v4009_v62 = vsel %vm1359_vm4, %v4806_v56, %v2479_v23  ;;  %2712 = vrot.lane.b32.xlu2 %v4807_v2, %s3024_s9  ;;  %v4810_v10 = vld [vmem:[#allocation50_spill] sm:$0xff]  ;;  %v4811_v2 = vld [vmem:[#allocation51_spill] sm:$0xff] }
 0x105   : > { %2707 = vrot.lane.b32.xlu1 %v4808_v59, %s3024_s9 }
 0x106   : > { %v2548_v31 = vpop.permute.xlu2 %2547 }
 0x107   : > { %2702 = vrot.lane.b32.xlu0 %v4809_v25, %s3022_s7  ;;  %v2550_v43 = vunpack.i.h.bf16 %v2548_v31  ;;  %v2549_v36 = vunpack.i.l.bf16 %v2548_v31  ;;  %v2498_v3 = vpop.permute.xlu1 %2497 }
 0x108   : > { %v2500_v39 = vunpack.i.h.bf16 %v2498_v3  ;;  %v2499_v22 = vunpack.i.l.bf16 %v2498_v3 }
 0x109   : > { %v4018_v9 = vsel %vm1392_vm5, %v1370_v63, %v2549_v36  ;;  %v4021_v44 = vsel %vm1392_vm5, %v1371_v52, %v2550_v43  ;;  %v2493_v17 = vpop.permute.xlu0 %2492  ;;  %v4812_v52 = vld [vmem:[#allocation37_spill] sm:$0xff] }
 0x10a   : > { %v1382_v46 = vsel %vm1359_vm4, %v3899_v42, %v2499_v22  ;;  %v1383_v27 = vsel %vm1359_vm4, %v3896_v45, %v2500_v39  ;;  %v2495_v16 = vunpack.i.h.bf16 %v2493_v17  ;;  %v2494_v23 = vunpack.i.l.bf16 %v2493_v17 }
 0x10c   : > { %v4029_v56 = vsel %vm1359_vm4, %v4810_v10, %v2495_v16  ;;  %v4033_v63 = vsel %vm1359_vm4, %v4811_v2, %v2494_v23  ;;  %2727 = vrot.lane.b32.xlu2 %v4812_v52, %s3022_s7  ;;  %v4814_v23 = vld [vmem:[#allocation20_spill] sm:$0xff] }
 0x10d   : > { %2722 = vrot.lane.b32.xlu1 %v3469_v34, %s3023_s8 }
 0x10e   : > { %v2563_v42 = vpop.permute.xlu2 %2562 }
 0x10f   : > { %2717 = vrot.lane.b32.xlu0 %v3439_v54, %s3023_s8  ;;  %v2565_v45 = vunpack.i.h.bf16 %v2563_v42  ;;  %v2564_v59 = vunpack.i.l.bf16 %v2563_v42  ;;  %v2513_v31 = vpop.permute.xlu1 %2512 }
 0x110   : > { %v2515_v25 = vunpack.i.h.bf16 %v2513_v31  ;;  %v2514_v43 = vunpack.i.l.bf16 %v2513_v31 }
 0x111   : > { %v4042_v36 = vsel %vm1392_vm5, %v1376_v21, %v2564_v59  ;;  %v4045_v3 = vsel %vm1392_vm5, %v1377_v53, %v2565_v45  ;;  %v2508_v39 = vpop.permute.xlu0 %2507  ;;  %v4813_v53 = vld [vmem:[#allocation31_spill] sm:$0xff] }
 0x112   : > { %v1388_v22 = vsel %vm1359_vm4, %v3933_v19, %v2514_v43  ;;  %v1389_v34 = vsel %vm1359_vm4, %v3930_v38, %v2515_v25  ;;  %v2510_v17 = vunpack.i.h.bf16 %v2508_v39  ;;  %v2509_v54 = vunpack.i.l.bf16 %v2508_v39 }
 0x114   : > { %v4053_v16 = vsel %vm1359_vm4, %v3784_v57, %v2510_v17  ;;  %v4057_v21 = vsel %vm1359_vm4, %v3787_v35, %v2509_v54  ;;  %2742 = vrot.lane.b32.xlu2 %v4813_v53, %s3022_s7 }
 0x115   : > { %2737 = vrot.lane.b32.xlu1 %v3495_v7, %s3023_s8 }
 0x116   : > { %v2578_v19 = vpop.permute.xlu2 %2577 }
 0x117   : > { %2732 = vrot.lane.b32.xlu0 %v4814_v23, %s3024_s9  ;;  %v2580_v38 = vunpack.i.h.bf16 %v2578_v19  ;;  %v2579_v10 = vunpack.i.l.bf16 %v2578_v19  ;;  %v2528_v2 = vpop.permute.xlu1 %2527 }
 0x118   : > { %v2530_v52 = vunpack.i.h.bf16 %v2528_v2  ;;  %v2529_v57 = vunpack.i.l.bf16 %v2528_v2 }
 0x119   : > { %v4066_v42 = vsel %vm1392_vm5, %v1382_v46, %v2579_v10  ;;  %v4069_v35 = vsel %vm1392_vm5, %v1383_v27, %v2580_v38  ;;  %v2523_v45 = vpop.permute.xlu0 %2522  ;;  %v4815_v27 = vld [vmem:[#allocation14_spill] sm:$0xff] }
 0x11a   : > { %v4073_v59 = vsel %vm1392_vm5, %v3957_v40, %v2529_v57  ;;  %v4077_v7 = vsel %vm1392_vm5, %v3961_v37, %v2530_v52  ;;  %v2525_v31 = vunpack.i.h.bf16 %v2523_v45  ;;  %v2524_v25 = vunpack.i.l.bf16 %v2523_v45  ;;  %v4816_v40 = vld [vmem:[#allocation8_spill] sm:$0xff]  ;;  %v4817_v37 = vld [vmem:[#allocation34_spill] sm:$0xff] }
 0x11c   : > { %v4081_v43 = vsel %vm1392_vm5, %v3818_v12, %v2524_v25  ;;  %v4085_v46 = vsel %vm1392_vm5, %v3821_v14, %v2525_v31  ;;  %2757 = vrot.lane.b32.xlu2 %v4815_v27, %s3024_s9 }
 0x11d   : > { %2752 = vrot.lane.b32.xlu1 %v4816_v40, %s3024_s9 }
 0x11e   : > { %v2593_v39 = vpop.permute.xlu2 %2592 }
 0x11f   : > { %2747 = vrot.lane.b32.xlu0 %v4817_v37, %s3022_s7  ;;  %v2595_v17 = vunpack.i.h.bf16 %v2593_v39  ;;  %v2594_v54 = vunpack.i.l.bf16 %v2593_v39  ;;  %v2543_v53 = vpop.permute.xlu1 %2542 }
 0x120   : > { %v2545_v19 = vunpack.i.h.bf16 %v2543_v53  ;;  %v2544_v12 = vunpack.i.l.bf16 %v2543_v53 }
 0x121   : > { %v4094_v23 = vsel %vm1392_vm5, %v1388_v22, %v2594_v54  ;;  %v4097_v14 = vsel %vm1392_vm5, %v1389_v34, %v2595_v17  ;;  %v2538_v38 = vpop.permute.xlu0 %2537  ;;  %v4818_v34 = vld [vmem:[#allocation42_spill] sm:$0xff]  ;;  %v4820_v17 = vld [vmem:[#allocation17_spill] sm:$0xff] }
 0x122   : > { %v4101_v10 = vsel %vm1392_vm5, %v3985_v58, %v2544_v12  ;;  %v4105_v2 = vsel %vm1392_vm5, %v3981_v5, %v2545_v19  ;;  %v2540_v52 = vunpack.i.h.bf16 %v2538_v38  ;;  %v2539_v57 = vunpack.i.l.bf16 %v2538_v38 }
 0x124   : > { %v4109_v45 = vsel %vm1392_vm5, %v3853_v48, %v2540_v52  ;;  %v4113_v22 = vsel %vm1392_vm5, %v3850_v18, %v2539_v57  ;;  %2772 = vrot.lane.b32.xlu2 %v4818_v34, %s3022_s7 }
 0x125   : > { %2767 = vrot.lane.b32.xlu1 %v3465_v28, %s3023_s8 }
 0x126   : > { %v4119_v58 = vpop.permute.xlu2 %2607 }
 0x127   : > { %2762 = vrot.lane.b32.xlu0 %v3435_v49, %s3023_s8  ;;  %v2558_v5 = vpop.permute.xlu1 %2557  ;;  %v4819_v49 = vld [vmem:[#allocation22_spill] sm:$0xff] }
 0x128   : > { %v2560_v31 = vunpack.i.h.bf16 %v2558_v5  ;;  %v2559_v25 = vunpack.i.l.bf16 %v2558_v5  ;;  %v4822_v5 = vld [vmem:[#allocation36_spill] sm:$0xff] }
 0x129   : > { %v2553_v48 = vpop.permute.xlu0 %2552 }
 0x12a   : > { %v1407_v27 = vsel %vm1392_vm5, %v4009_v62, %v2559_v25  ;;  %v1408_v18 = vsel %vm1392_vm5, %v4005_v51, %v2560_v31  ;;  %v2555_v40 = vunpack.i.h.bf16 %v2553_v48  ;;  %v2554_v39 = vunpack.i.l.bf16 %v2553_v48  ;;  %v4821_v51 = vld [vmem:[#allocation45_spill] sm:$0xff] }
 0x12c   : > { %v4129_v28 = vsel %vm1392_vm5, %v3883_v1, %v2554_v39  ;;  %v4133_v37 = vsel %vm1392_vm5, %v3886_v47, %v2555_v40  ;;  %2787 = vrot.lane.b32.xlu2 %v4819_v49, %s3024_s9 }
 0x12d   : > { %2782 = vrot.lane.b32.xlu1 %v4820_v17, %s3024_s9 }
 0x12e   : > { %v4139_v62 = vpop.permute.xlu2 %2622 }
 0x12f   : > { %2777 = vrot.lane.b32.xlu0 %v4821_v51, %s3022_s7  ;;  %v2573_v54 = vpop.permute.xlu1 %2572 }
 0x130   : > { %v2575_v53 = vunpack.i.h.bf16 %v2573_v54  ;;  %v2574_v19 = vunpack.i.l.bf16 %v2573_v54  ;;  %v4824_v54 = vld [vmem:[#allocation10_spill] sm:$0xff] }
 0x131   : > { %v2568_v1 = vpop.permute.xlu0 %2567 }
 0x132   : > { %v1413_v12 = vsel %vm1392_vm5, %v4033_v63, %v2574_v19  ;;  %v1414_v47 = vsel %vm1392_vm5, %v4029_v56, %v2575_v53  ;;  %v2570_v38 = vunpack.i.h.bf16 %v2568_v1  ;;  %v2569_v52 = vunpack.i.l.bf16 %v2568_v1  ;;  %v4825_v53 = vld [vmem:[#allocation39_spill] sm:$0xff] }
 0x134   : > { %v4149_v57 = vsel %vm1392_vm5, %v3915_v50, %v2569_v52  ;;  %v4153_v34 = vsel %vm1392_vm5, %v3918_v29, %v2570_v38  ;;  %2802 = vrot.lane.b32.xlu2 %v4822_v5, %s3022_s7 }
 0x135   : > { %2797 = vrot.lane.b32.xlu1 %v4795_v4, %s3023_s8 }
 0x136   : > { %v2638_v63 = vpop.permute.xlu2 %2637 }
 0x137   : > { %2792 = vrot.lane.b32.xlu0 %v3535_v55, %s3023_s8  ;;  %v2640_v56 = vunpack.i.h.bf16 %v2638_v63  ;;  %v2639_v31 = vunpack.i.l.bf16 %v2638_v63  ;;  %v2588_v25 = vpop.permute.xlu1 %2587 }
 0x138   : > { %v2590_v50 = vunpack.i.h.bf16 %v2588_v25  ;;  %v2589_v48 = vunpack.i.l.bf16 %v2588_v25 }
 0x139   : > { %v4162_v40 = vsel %vm1425_vm6, %v1407_v27, %v2639_v31  ;;  %v4165_v29 = vsel %vm1425_vm6, %v1408_v18, %v2640_v56  ;;  %v2583_v39 = vpop.permute.xlu0 %2582  ;;  %v4823_v18 = vld [vmem:[#allocation13_spill] sm:$0xff] }
 0x13a   : > { %v1419_v4 = vsel %vm1392_vm5, %v4057_v21, %v2589_v48  ;;  %v1420_v49 = vsel %vm1392_vm5, %v4053_v16, %v2590_v50  ;;  %v2585_v55 = vunpack.i.h.bf16 %v2583_v39  ;;  %v2584_v17 = vunpack.i.l.bf16 %v2583_v39  ;;  %v4826_v31 = vld [vmem:[#allocation41_spill] sm:$0xff] }
 0x13c   : > { %v4173_v51 = vsel %vm1392_vm5, %v3944_v30, %v2584_v17  ;;  %v4177_v27 = vsel %vm1392_vm5, %v3947_v61, %v2585_v55  ;;  %2817 = vrot.lane.b32.xlu2 %v4823_v18, %s3024_s9 }
 0x13d   : > { %2812 = vrot.lane.b32.xlu1 %v4824_v54, %s3024_s9 }
 0x13e   : > { %v2653_v21 = vpop.permute.xlu2 %2652 }
 0x13f   : > { %2807 = vrot.lane.b32.xlu0 %v4825_v53, %s3022_s7  ;;  %v2655_v16 = vunpack.i.h.bf16 %v2653_v21  ;;  %v2654_v19 = vunpack.i.l.bf16 %v2653_v21  ;;  %v4185_v1 = vpop.permute.xlu1 %2602 }
 0x141   : > { %v4188_v30 = vsel %vm1425_vm6, %v1413_v12, %v2654_v19  ;;  %v4191_v61 = vsel %vm1425_vm6, %v1414_v47, %v2655_v16  ;;  %v2598_v38 = vpop.permute.xlu0 %2597  ;;  %v4827_v16 = vld [vmem:[#allocation26_spill] sm:$0xff] }
 0x142   : > { %v2600_v52 = vunpack.i.h.bf16 %v2598_v38  ;;  %v2599_v5 = vunpack.i.l.bf16 %v2598_v38  ;;  %v4829_v38 = vld [vmem:[#allocation44_spill] sm:$0xff] }
 0x144   : > { %v4195_v63 = vsel %vm1392_vm5, %v3970_v60, %v2599_v5  ;;  %v4199_v56 = vsel %vm1392_vm5, %v3973_v24, %v2600_v52  ;;  %2832 = vrot.lane.b32.xlu2 %v4826_v31, %s3022_s7  ;;  %v1577_v60 = vld [vmem:[%s4636_s1 + $0x10] sm:$0x3] }
 0x145   : > { %2827 = vrot.lane.b32.xlu1 %v3509_v26, %s3023_s8  ;;  %v1587_v39 = vunpack.c.l.b16 %v1577_v60  ;;  %v2076_v60 = vld [vmem:[%s4636_s1] sm:$0xff] }
 0x146   : > { %v2668_v12 = vpop.permute.xlu2 %2667 }
 0x147   : > { %2822 = vrot.lane.b32.xlu0 %v3479_v33, %s3023_s8  ;;  %v2670_v47 = vunpack.i.h.bf16 %v2668_v12  ;;  %v2669_v25 = vunpack.i.l.bf16 %v2668_v12  ;;  %v2618_v50 = vpop.permute.xlu1 %2617  ;;  %v1590_v53 = vpack.c.b16 %v1587_v39, %v1587_v39 }
 0x148   : > { %v2620_v48 = vunpack.i.h.bf16 %v2618_v50  ;;  %v2619_v24 = vunpack.i.l.bf16 %v2618_v50 }
 0x149   : > { %v4211_v55 = vsel %vm1425_vm6, %v1419_v4, %v2669_v25  ;;  %v4214_v17 = vsel %vm1425_vm6, %v1420_v49, %v2670_v47  ;;  %v2613_v26 = vpop.permute.xlu0 %2612 }
 0x14a   : > { %v4218_v33 = vsel %vm1425_vm6, %v4113_v22, %v2619_v24  ;;  %v4222_v18 = vsel %vm1425_vm6, %v4109_v45, %v2620_v48  ;;  %v2615_v54 = vunpack.i.h.bf16 %v2613_v26  ;;  %v2614_v21 = vunpack.i.l.bf16 %v2613_v26  ;;  %v4828_v22 = vld [vmem:[#allocation25_spill] sm:$0xff] }
 0x14b   : > { %v1644_v45 = vsel %vm1642_vm7, %v1590_v53, 0 }
 0x14c   : > { %v4226_v4 = vsel %vm1425_vm6, %v3994_v6, %v2614_v21  ;;  %v4230_v49 = vsel %vm1425_vm6, %v3997_v32, %v2615_v54  ;;  %2847 = vrot.lane.b32.xlu2 %v4827_v16, %s3024_s9  ;;  %1651 = vmatpush.bf16.msra.mxu0 %v1644_v45  ;;  %v2077_v32 = vld [vmem:[%s4636_s1 + $0x8] sm:$0xff] }
 0x14d   : > { %2842 = vrot.lane.b32.xlu1 %v4828_v22, %s3024_s9  ;;  %2218 = vmatpush.bf16.msra.mxu1 %v1644_v45  ;;  %v4832_v21 = vld [vmem:[#allocation21_spill] sm:$0xff] }
 0x14e   : > { %v4236_v19 = vpop.permute.xlu2 %2682  ;;  %2219 = vmatpush.bf16.msra.mxu2 %v1644_v45  ;;  %2220 = vmatpush.bf16.msra.mxu3 %v1644_v45 }
 0x14f   : > { %2837 = vrot.lane.b32.xlu0 %v4829_v38, %s3022_s7  ;;  %v2633_v6 = vpop.permute.xlu1 %2632  ;;  %v232_v38 = vld [vmem:[%s3099_s28 + $0xcc] sm:$0xff]  }
 0x150   : > { %v2635_v52 = vunpack.i.h.bf16 %v2633_v6  ;;  %v2634_v5 = vunpack.i.l.bf16 %v2633_v6  ;;  %1652 = vmatpush.bf16.msra.mxu0 %v2077_v32 }
 0x151   : > { %v2628_v31 = vpop.permute.xlu0 %2627  ;;  %2221 = vmatpush.bf16.msra.mxu1 %v2077_v32 }
 0x152   : > { %v4245_v12 = vsel %vm1425_vm6, %v4129_v28, %v2634_v5  ;;  %v4249_v47 = vsel %vm1425_vm6, %v4133_v37, %v2635_v52  ;;  %v2630_v25 = vunpack.i.h.bf16 %v2628_v31  ;;  %v2629_v50 = vunpack.i.l.bf16 %v2628_v31  ;;  %2222 = vmatpush.bf16.msra.mxu2 %v2077_v32  ;;  %v4830_v37 = vld [vmem:[#allocation38_spill] sm:$0xff]  ;;  %2223 = vmatpush.bf16.msra.mxu3 %v2077_v32 }
 0x153   : > { %v234_v52 = vld [vmem:[%s3099_s28 + $0xd4] sm:$0x1]  ;;  %s2078_s28 = sshll.u32 %s3067_s16, 7 }
 0x154   : > { %v4256_v48 = vsel %vm1425_vm6, %v4018_v9, %v2629_v50  ;;  %v4260_v28 = vsel %vm1425_vm6, %v4021_v44, %v2630_v25  ;;  %2862 = vrot.lane.b32.xlu2 %v4830_v37, %s3022_s7  ;;  %1653 = vmatpush.bf16.msra.mxu0 %v2076_v60  ;;  %v287_v25 = vunpack.c.h.bf16 %v232_v38  ;;  %v4833_v50 = vld [vmem:[#allocation43_spill] sm:$0xff]  ;;  %s1925_s5 = scalar_lea.hbm %s4637_s2, %s2078_s28 }
 0x155   : > { %2857 = vrot.lane.b32.xlu1 %v4801_v11, %s3023_s8  ;;  %2224 = vmatpush.bf16.msra.mxu1 %v2076_v60 }
 0x156   : > { %2225 = vmatpush.bf16.msra.mxu2 %v2076_v60  ;;  %v4268_v9 = vpop.permute.xlu2 %2697  ;;  %2226 = vmatpush.bf16.msra.mxu3 %v2076_v60 }
 0x157   : > { %2852 = vrot.lane.b32.xlu0 %v4797_v20, %s3023_s8  ;;  %v2648_v24 = vpop.permute.xlu1 %2647  ;;  %v4831_v20 = vld [vmem:[#allocation40_spill] sm:$0xff] }
 0x158   : > { %v2650_v39 = vunpack.i.h.bf16 %v2648_v24  ;;  %v2649_v44 = vunpack.i.l.bf16 %v2648_v24 }
 0x159   : > { %v4270_v26 = vpop.permute.xlu0 %2642 }
 0x15a   : > { %v4274_v54 = vsel %vm1425_vm6, %v4149_v57, %v2649_v44  ;;  %v4278_v11 = vsel %vm1425_vm6, %v4153_v34, %v2650_v39 }
 0x15c   : > { %2877 = vrot.lane.b32.xlu2 %v4831_v20, %s3022_s7 }
 0x15d   : > { %2872 = vrot.lane.b32.xlu1 %v4791_v0, %s3023_s8 }
 0x15e   : > { %v4287_v57 = vpop.permute.xlu2 %2712 }
 0x15f   : > { %2867 = vrot.lane.b32.xlu0 %v4832_v21, %s3024_s9  ;;  %v2663_v53 = vpop.permute.xlu1 %2662 }
 0x160   : > { %v2665_v16 = vunpack.i.h.bf16 %v2663_v53  ;;  %v2664_v22 = vunpack.i.l.bf16 %v2663_v53 }
 0x161   : > { %v2658_v45 = vpop.permute.xlu0 %2657 }
 0x162   : > { %v4291_v34 = vsel %vm1425_vm6, %v4173_v51, %v2664_v22  ;;  %v4295_v6 = vsel %vm1425_vm6, %v4177_v27, %v2665_v16  ;;  %v2660_v32 = vunpack.i.h.bf16 %v2658_v45  ;;  %v2659_v0 = vunpack.i.l.bf16 %v2658_v45 }
 0x163   : > { %v286_v51 = vunpack.c.l.bf16 %v232_v38  ;;  %v288_v27 = vunpack.c.l.bf16 %v234_v52  ;;  %v2604_v16 = vunpack.i.l.bf16 %v4185_v1 }
 0x164   : > { %v4300_v5 = vsel %vm1425_vm6, %v4066_v42, %v2659_v0  ;;  %v4304_v31 = vsel %vm1425_vm6, %v4069_v35, %v2660_v32  ;;  %2892 = vrot.lane.b32.xlu2 %v3795_v41, %s3024_s9  ;;  %v521_v35 = vrot.slane %v287_v25, 2  ;;  %v2605_v0 = vunpack.i.h.bf16 %v4185_v1 }
 0x165   : > { %2887 = vrot.lane.b32.xlu1 %v4789_v13, %s3024_s9  ;;  %v2906_v24 = vpack.i.bf16 %v287_v25, %v286_v51  ;;  %v520_v44 = vrot.slane %v286_v51, 2  ;;  %v523_v20 = vrot.slane %v288_v27, 2  ;;  %v515_v22 = vrot.slane %v286_v51, 1 }
 0x166   : > { %v4321_v45 = vpop.permute.xlu2 %2727 }
 0x167   : > { %2882 = vrot.lane.b32.xlu0 %v4833_v50, %s3022_s7  ;;  %v2678_v60 = vpop.permute.xlu1 %2677  ;;  %v522_v52 = vsel %vm418_vm1, %v520_v44, %v521_v35  ;;  %v524_v51 = vsel %vm418_vm1, %v521_v35, %v523_v20  ;;  %v2684_v50 = vunpack.i.l.bf16 %v4236_v19 }
 0x168   : > { %v2680_v37 = vunpack.i.h.bf16 %v2678_v60  ;;  %v2679_v42 = vunpack.i.l.bf16 %v2678_v60 }
 0x169   : > { %v2673_v39 = vpop.permute.xlu0 %2672 }
 0x16a   : > { %v4314_v41 = vsel %vm1425_vm6, %v4195_v63, %v2679_v42  ;;  %v4318_v21 = vsel %vm1425_vm6, %v4199_v56, %v2680_v37  ;;  %v2675_v13 = vunpack.i.h.bf16 %v2673_v39  ;;  %v2674_v53 = vunpack.i.l.bf16 %v2673_v39 }
 0x16b   : > { %v516_v63 = vrot.slane %v287_v25, 1  ;;  %v518_v56 = vrot.slane %v288_v27, 1  ;;  %v1426_v25 = vsel %vm1425_vm6, %v4081_v43, %v2604_v16  ;;  %v2916_v42 = vpack.i.bf16 %v524_v51, %v522_v52 }
 0x16c   : > { %v4325_v38 = vsel %vm1425_vm6, %v4094_v23, %v2674_v53  ;;  %v4329_v32 = vsel %vm1425_vm6, %v4097_v14, %v2675_v13  ;;  %2907 = vrot.lane.b32.xlu2 %v2906_v24, %s3022_s7  ;;  %v2685_v23 = vunpack.i.h.bf16 %v4236_v19  ;;  %v1427_v19 = vsel %vm1425_vm6, %v4085_v46, %v2605_v0  ;;  %s1928_s7 = sshll.u32 %s1925_s5, 4  ;;  %s1929_s7 = int_to_ptr.hbm [resolvable:$true] %s1928_s7 }
 0x16d   : > { %2902 = vrot.lane.b32.xlu1 %v3949_v8, %s3023_s8  ;;  %v517_v8 = vsel %vm337_vm0, %v515_v22, %v516_v63  ;;  %v519_v1 = vsel %vm337_vm0, %v516_v63, %v518_v56  ;;  %v2625_v63 = vunpack.i.h.bf16 %v4139_v62  ;;  %v2624_v56 = vunpack.i.l.bf16 %v4139_v62 }
 0x16e   : > { %v1460_v43 = vsel %vm1458_vm8, %v1427_v19, %v2685_v23  ;;  %v2911_v44 = vpack.i.bf16 %v519_v1, %v517_v8  ;;  %v4354_v46 = vpop.permute.xlu2 %2742  ;;  %v2610_v23 = vunpack.i.h.bf16 %v4119_v58  ;;  %v2700_v8 = vunpack.i.h.bf16 %v4268_v9 }
 0x16f   : > { %2897 = vrot.lane.b32.xlu0 %v4796_v15, %s3023_s8  ;;  %v2693_v14 = vpop.permute.xlu1 %2692  ;;  %v1459_v15 = vsel %vm1458_vm8, %v1426_v25, %v2684_v50  ;;  %v2609_v50 = vunpack.i.l.bf16 %v4119_v58  ;;  %v1435_v25 = vsel %vm1425_vm6, %v4105_v2, %v2625_v63  ;;  %v2699_v1 = vunpack.i.l.bf16 %v4268_v9 }
 0x170   : > { %v2695_v27 = vunpack.i.h.bf16 %v2693_v14  ;;  %v2694_v60 = vunpack.i.l.bf16 %v2693_v14  ;;  %v1434_v14 = vsel %vm1425_vm6, %v4101_v10, %v2624_v56  ;;  %v2715_v62 = vunpack.i.h.bf16 %v4287_v57 }
 0x171   : > { %v2688_v37 = vpop.permute.xlu0 %2687  ;;  %v1428_v10 = vsel %vm1425_vm6, %v4073_v59, %v2609_v50  ;;  %v1429_v2 = vsel %vm1425_vm6, %v4077_v7, %v2610_v23  ;;  %v2730_v23 = vunpack.i.h.bf16 %v4321_v45  ;;  %v2729_v50 = vunpack.i.l.bf16 %v4321_v45 }
 0x172   : > { %v2690_v24 = vunpack.i.h.bf16 %v2688_v37  ;;  %v2689_v39 = vunpack.i.l.bf16 %v2688_v37 }
 0x174   : > { %v1492_v35 = vsel %vm1491_vm9, %v1459_v15, %v2689_v39  ;;  %v1493_v20 = vsel %vm1491_vm9, %v1460_v43, %v2690_v24  ;;  %v1461_v15 = vsel %vm1458_vm8, %v1428_v10, %v2699_v1 }
 0x175   : > { %2917 = vrot.lane.b32.xlu1 %v2916_v42, %s3023_s8  ;;  %v1525_v13 = vsel %vm1524_vm10, %v1492_v35, %v2694_v60  ;;  %v1526_v53 = vsel %vm1524_vm10, %v1493_v20, %v2695_v27  ;;  %v2714_v27 = vunpack.i.l.bf16 %v4287_v57  ;;  %v1462_v57 = vsel %vm1458_vm8, %v1429_v2, %v2700_v8  ;;  %s1909_s8 = scalar_lea.sflag [#allocation3], %s4522_s25 }
 0x176   : > { %v1557_v16 = vpack.c.bf16 %v1526_v53, %v1525_v13  ;;  %v4376_v24 = vpop.permute.xlu2 %2757 }
 0x177   : > { %2912 = vrot.lane.b32.xlu0 %v2911_v44, %s3024_s9  ;;  %v2708_v22 = vpop.permute.xlu1 %2707  ;;  %s2935_s9 = sshra.s32 %s1929_s7, 4  ;;  %s2936_s9 = int_to_ptr.hbm [resolvable:$true] %s2935_s9 }
 0x178   : > { %2053 = vmatmul.msk.bf16.vlgmr.msra.gmra.mxu0 %vm1593_vm11, %v1557_v16  ;;  %v2710_v42 = vunpack.i.h.bf16 %v2708_v22  ;;  %v2709_v58 = vunpack.i.l.bf16 %v2708_v22  ;;  %s2937_s10 = scalar_lea.hbm %s2936_s9, 128  ;;  %p2942_p0 = scmp.lt.s32.totalorder %s2936_s9, %s4637_s2 }
 0x179   : > { %v2703_v0 = vpop.permute.xlu0 %2702  ;;  %p2938_p11 = scmp.ne.s32.totalorder %s2936_s9, %s2937_s10  ;;  %p2943_p1 = scmp.lt.s32.totalorder %s2941_s19, %s2937_s10 }
 0x17a   : > { %v2705_v52 = vunpack.i.h.bf16 %v2703_v0  ;;  %v2704_v51 = vunpack.i.l.bf16 %v2703_v0  ;;  %v1494_v7 = vsel %vm1491_vm9, %v1461_v15, %v2709_v58  ;;  %v1495_v16 = vsel %vm1491_vm9, %v1462_v57, %v2710_v42 }
 0x17b   : > { %p2939_p12 = pnand %p2938_p11, %p3084_p5  ;;  %p2944_p2 = por %p2943_p1, %p2942_p0 }
 0x17c   : > { %v1467_v60 = vsel %vm1458_vm8, %v1434_v14, %v2704_v51  ;;  %v1468_v37 = vsel %vm1458_vm8, %v1435_v25, %v2705_v52  ;;  %v2645_v52 = vunpack.i.h.bf16 %v4270_v26  ;;  %v2644_v51 = vunpack.i.l.bf16 %v4270_v26 }
 0x17d   : > { %v1500_v44 = vsel %vm1491_vm9, %v1467_v60, %v2714_v27  ;;  %v1501_v35 = vsel %vm1491_vm9, %v1468_v37, %v2715_v62  ;;  %p2940_p13 = pneg %p2939_p12 }
 0x17e   : > { %v1442_v62 = vsel %vm1425_vm6, %v4042_v36, %v2644_v51  ;;  %v1443_v27 = vsel %vm1425_vm6, %v4045_v3, %v2645_v52  ;;  %v4398_v60 = vpop.permute.xlu2 %2772 }
 0x17f   : > { %v2723_v19 = vpop.permute.xlu1 %2722  ;;  %v1475_v42 = vsel %vm1458_vm8, %v1442_v62, %v2729_v50  ;;  %v1476_v45 = vsel %vm1458_vm8, %v1443_v27, %v2730_v23  ;;  %p2945_p3 = pnand %p2944_p2, %p2940_p13 }
 0x180   : > { %v2725_v9 = vunpack.i.h.bf16 %v2723_v19  ;;  %v2724_v39 = vunpack.i.l.bf16 %v2723_v19 }
 0x181   : > { %v2718_v43 = vpop.permute.xlu0 %2717 }
 0x182   : > { %v2720_v20 = vunpack.i.h.bf16 %v2718_v43  ;;  %v2719_v13 = vunpack.i.l.bf16 %v2718_v43  ;;  %v1533_v59 = vsel %vm1524_vm10, %v1500_v44, %v2724_v39  ;;  %v1534_v53 = vsel %vm1524_vm10, %v1501_v35, %v2725_v9 }
 0x183   : > { %v1561_v22 = vpack.c.bf16 %v1534_v53, %v1533_v59  ;;  %v2745_v43 = vunpack.i.h.bf16 %v4354_v46  ;;  %v2744_v44 = vunpack.i.l.bf16 %v4354_v46  ;;  %v2760_v35 = vunpack.i.h.bf16 %v4376_v24 }
 0x184   : > { %v1527_v63 = vsel %vm1524_vm10, %v1494_v7, %v2719_v13  ;;  %v1528_v56 = vsel %vm1524_vm10, %v1495_v16, %v2720_v20  ;;  %v2759_v20 = vunpack.i.l.bf16 %v4376_v24 }
 0x185   : > { %2057 = vmatmul.msk.bf16.vlgmr.msra.gmra.mxu1 %vm1593_vm11, %v1561_v22  ;;  %v1558_v0 = vpack.c.bf16 %v1528_v56, %v1527_v63  ;;  %v1463_v56 = vsel %vm1458_vm8, %v4226_v4, %v2744_v44  ;;  %v1464_v46 = vsel %vm1458_vm8, %v4230_v49, %v2745_v43 }
 0x186   : > { %v2788_v57 = vpop.permute.xlu2 %2787 }
 0x187   : > { %v2738_v14 = vpop.permute.xlu1 %2737 }
 0x188   : > { %2054 = vmatmul.msk.bf16.gmra.mxu0 %vm1593_vm11, %v1558_v0  ;;  %v2740_v25 = vunpack.i.h.bf16 %v2738_v14  ;;  %v2739_v8 = vunpack.i.l.bf16 %v2738_v14 }
 0x189   : > { %v2733_v1 = vpop.permute.xlu0 %2732 }
 0x18a   : > { %v2735_v37 = vunpack.i.h.bf16 %v2733_v1  ;;  %v2734_v26 = vunpack.i.l.bf16 %v2733_v1 }
 0x18c   : > { %v1508_v58 = vsel %vm1491_vm9, %v1475_v42, %v2734_v26  ;;  %v1509_v19 = vsel %vm1491_vm9, %v1476_v45, %v2735_v37  ;;  %v2775_v42 = vunpack.i.h.bf16 %v4398_v60  ;;  %v2774_v45 = vunpack.i.l.bf16 %v4398_v60 }
 0x18d   : > { %v1541_v10 = vsel %vm1524_vm10, %v1508_v58, %v2739_v8  ;;  %v1542_v2 = vsel %vm1524_vm10, %v1509_v19, %v2740_v25  ;;  %v2790_v58 = vunpack.i.h.bf16 %v2788_v57  ;;  %v2789_v19 = vunpack.i.l.bf16 %v2788_v57 }
 0x18e   : > { %v1565_v36 = vpack.c.bf16 %v1542_v2, %v1541_v10  ;;  %v2803_v1 = vpop.permute.xlu2 %2802  ;;  %v1477_v44 = vsel %vm1458_vm8, %v4274_v54, %v2774_v45  ;;  %v1478_v60 = vsel %vm1458_vm8, %v4278_v11, %v2775_v42 }
 0x18f   : > { %v2753_v9 = vpop.permute.xlu1 %2752 }
 0x190   : > { %2061 = vmatmul.msk.bf16.vlgmr.msra.gmra.mxu2 %vm1593_vm11, %v1565_v36  ;;  %v2755_v53 = vunpack.i.h.bf16 %v2753_v9  ;;  %v2754_v7 = vunpack.i.l.bf16 %v2753_v9 }
 0x191   : > { %v2748_v3 = vpop.permute.xlu0 %2747 }
 0x192   : > { %v2750_v39 = vunpack.i.h.bf16 %v2748_v3  ;;  %v2749_v15 = vunpack.i.l.bf16 %v2748_v3  ;;  %v1496_v50 = vsel %vm1491_vm9, %v1463_v56, %v2754_v7  ;;  %v1497_v14 = vsel %vm1491_vm9, %v1464_v46, %v2755_v53 }
 0x194   : > { %v1469_v13 = vsel %vm1458_vm8, %v4256_v48, %v2749_v15  ;;  %v1470_v59 = vsel %vm1458_vm8, %v4260_v28, %v2750_v39 }
 0x195   : > { %v1502_v24 = vsel %vm1491_vm9, %v1469_v13, %v2759_v20  ;;  %v1503_v52 = vsel %vm1491_vm9, %v1470_v59, %v2760_v35 }
 0x196   : > { %v2818_v39 = vpop.permute.xlu2 %2817 }
 0x197   : > { %v2768_v16 = vpop.permute.xlu1 %2767 }
 0x198   : > { %v2770_v22 = vunpack.i.h.bf16 %v2768_v16  ;;  %v2769_v63 = vunpack.i.l.bf16 %v2768_v16 }
 0x199   : > { %v2763_v0 = vpop.permute.xlu0 %2762 }
 0x19a   : > { %v2765_v48 = vunpack.i.h.bf16 %v2763_v0  ;;  %v2764_v51 = vunpack.i.l.bf16 %v2763_v0  ;;  %v1535_v28 = vsel %vm1524_vm10, %v1502_v24, %v2769_v63  ;;  %v1536_v23 = vsel %vm1524_vm10, %v1503_v52, %v2770_v22 }
 0x19b   : > { %v1562_v25 = vpack.c.bf16 %v1536_v23, %v1535_v28  ;;  %v2805_v52 = vunpack.i.h.bf16 %v2803_v1  ;;  %v2819_v28 = vunpack.i.l.bf16 %v2818_v39 }
 0x19c   : > { %v1529_v4 = vsel %vm1524_vm10, %v1496_v50, %v2764_v51  ;;  %v1530_v49 = vsel %vm1524_vm10, %v1497_v14, %v2765_v48  ;;  %v2804_v48 = vunpack.i.l.bf16 %v2803_v1  ;;  %v2820_v51 = vunpack.i.h.bf16 %v2818_v39 }
 0x19d   : > { %v1559_v8 = vpack.c.bf16 %v1530_v49, %v1529_v4  ;;  %2058 = vmatmul.msk.bf16.gmra.mxu1 %vm1593_vm11, %v1562_v25 }
 0x19e   : > { %v2833_v46 = vpop.permute.xlu2 %2832 }
 0x19f   : > { %2055 = vmatmul.msk.bf16.gmra.mxu0 %vm1593_vm11, %v1559_v8  ;;  %v2783_v62 = vpop.permute.xlu1 %2782 }
 0x1a0   : > { %v2785_v36 = vunpack.i.h.bf16 %v2783_v62  ;;  %v2784_v9 = vunpack.i.l.bf16 %v2783_v62  ;;  %v1465_v62 = vsel %vm1458_vm8, %v4218_v33, %v2804_v48 }
 0x1a1   : > { %v2778_v27 = vpop.permute.xlu0 %2777 }
 0x1a2   : > { %v2780_v37 = vunpack.i.h.bf16 %v2778_v27  ;;  %v2779_v26 = vunpack.i.l.bf16 %v2778_v27  ;;  %v1510_v53 = vsel %vm1491_vm9, %v1477_v44, %v2784_v9  ;;  %v1511_v7 = vsel %vm1491_vm9, %v1478_v60, %v2785_v36 }
 0x1a3   : > { %v1466_v27 = vsel %vm1458_vm8, %v4222_v18, %v2805_v52  ;;  %v2834_v44 = vunpack.i.l.bf16 %v2833_v46 }
 0x1a4   : > { %v1483_v10 = vsel %vm1458_vm8, %v4291_v34, %v2779_v26  ;;  %v1484_v2 = vsel %vm1458_vm8, %v4295_v6, %v2780_v37 }
 0x1a5   : > { %v1516_v57 = vsel %vm1491_vm9, %v1483_v10, %v2789_v19  ;;  %v1517_v34 = vsel %vm1491_vm9, %v1484_v2, %v2790_v58 }
 0x1a6   : > { %v2848_v33 = vpop.permute.xlu2 %2847 }
 0x1a7   : > { %v2798_v3 = vpop.permute.xlu1 %2797  ;;  %v2850_v60 = vunpack.i.h.bf16 %v2848_v33 }
 0x1a8   : > { %v2800_v15 = vunpack.i.h.bf16 %v2798_v3  ;;  %v2799_v43 = vunpack.i.l.bf16 %v2798_v3 }
 0x1a9   : > { %v2793_v35 = vpop.permute.xlu0 %2792 }
 0x1aa   : > { %v2795_v20 = vunpack.i.h.bf16 %v2793_v35  ;;  %v2794_v13 = vunpack.i.l.bf16 %v2793_v35  ;;  %v1549_v6 = vsel %vm1524_vm10, %v1516_v57, %v2799_v43  ;;  %v1550_v59 = vsel %vm1524_vm10, %v1517_v34, %v2800_v15 }
 0x1ab   : > { %v1569_v16 = vpack.c.bf16 %v1550_v59, %v1549_v6  ;;  %v2835_v43 = vunpack.i.h.bf16 %v2833_v46  ;;  %v2849_v35 = vunpack.i.l.bf16 %v2848_v33 }
 0x1ac   : > { %v1543_v54 = vsel %vm1524_vm10, %v1510_v53, %v2794_v13  ;;  %v1544_v11 = vsel %vm1524_vm10, %v1511_v7, %v2795_v20 }
 0x1ad   : > { %v1566_v22 = vpack.c.bf16 %v1544_v11, %v1543_v54  ;;  %2065 = vmatmul.msk.bf16.vlgmr.msra.gmra.mxu3 %vm1593_vm11, %v1569_v16  ;;  %v1479_v16 = vsel %vm1458_vm8, %v4188_v30, %v2834_v44  ;;  %v1480_v54 = vsel %vm1458_vm8, %v4191_v61, %v2835_v43 }
 0x1ae   : > { %v2863_v57 = vpop.permute.xlu2 %2862 }
 0x1af   : > { %2062 = vmatmul.msk.bf16.gmra.mxu2 %vm1593_vm11, %v1566_v22  ;;  %v2813_v63 = vpop.permute.xlu1 %2812 }
 0x1b0   : > { %v2815_v14 = vunpack.i.h.bf16 %v2813_v63  ;;  %v2814_v25 = vunpack.i.l.bf16 %v2813_v63 }
 0x1b1   : > { %v2808_v56 = vpop.permute.xlu0 %2807 }
 0x1b2   : > { %v2810_v0 = vunpack.i.h.bf16 %v2808_v56  ;;  %v2809_v24 = vunpack.i.l.bf16 %v2808_v56  ;;  %v1498_v58 = vsel %vm1491_vm9, %v1465_v62, %v2814_v25  ;;  %v1499_v19 = vsel %vm1491_vm9, %v1466_v27, %v2815_v14 }
 0x1b4   : > { %v1471_v23 = vsel %vm1458_vm8, %v4245_v12, %v2809_v24  ;;  %v1472_v50 = vsel %vm1458_vm8, %v4249_v47, %v2810_v0 }
 0x1b5   : > { %v1504_v37 = vsel %vm1491_vm9, %v1471_v23, %v2819_v28  ;;  %v1505_v26 = vsel %vm1491_vm9, %v1472_v50, %v2820_v51  ;;  %v2865_v51 = vunpack.i.h.bf16 %v2863_v57  ;;  %v2864_v28 = vunpack.i.l.bf16 %v2863_v57 }
 0x1b6   : > { %v2878_v50 = vpop.permute.xlu2 %2877 }
 0x1b7   : > { %v2828_v4 = vpop.permute.xlu1 %2827  ;;  %v1473_v62 = vsel %vm1458_vm8, %v4162_v40, %v2864_v28  ;;  %v1474_v27 = vsel %vm1458_vm8, %v4165_v29, %v2865_v51  ;;  %v2880_v40 = vunpack.i.h.bf16 %v2878_v50  ;;  %v2879_v33 = vunpack.i.l.bf16 %v2878_v50 }
 0x1b8   : > { %v2830_v49 = vunpack.i.h.bf16 %v2828_v4  ;;  %v2829_v8 = vunpack.i.l.bf16 %v2828_v4 }
 0x1b9   : > { %v2823_v1 = vpop.permute.xlu0 %2822  ;;  %v1481_v44 = vsel %vm1458_vm8, %v4300_v5, %v2879_v33 }
 0x1ba   : > { %v2825_v12 = vunpack.i.h.bf16 %v2823_v1  ;;  %v2824_v42 = vunpack.i.l.bf16 %v2823_v1  ;;  %v1537_v47 = vsel %vm1524_vm10, %v1504_v37, %v2829_v8  ;;  %v1538_v45 = vsel %vm1524_vm10, %v1505_v26, %v2830_v49 }
 0x1bb   : > { %v1563_v10 = vpack.c.bf16 %v1538_v45, %v1537_v47 }
 0x1bc   : > { %v1531_v2 = vsel %vm1524_vm10, %v1498_v58, %v2824_v42  ;;  %v1532_v18 = vsel %vm1524_vm10, %v1499_v19, %v2825_v12 }
 0x1bd   : > { %v1560_v36 = vpack.c.bf16 %v1532_v18, %v1531_v2  ;;  %2059 = vmatmul.msk.bf16.gmra.mxu1 %vm1593_vm11, %v1563_v10 }
 0x1be   : > { %v2893_v58 = vpop.permute.xlu2 %2892 }
 0x1bf   : > { %2056 = vmatmul.msk.bf16.gmra.mxu0 %vm1593_vm11, %v1560_v36  ;;  %v2843_v9 = vpop.permute.xlu1 %2842  ;;  %v2895_v2 = vunpack.i.h.bf16 %v2893_v58  ;;  %v2894_v29 = vunpack.i.l.bf16 %v2893_v58 }
 0x1c0   : > { %v2845_v13 = vunpack.i.h.bf16 %v2843_v9  ;;  %v2844_v6 = vunpack.i.l.bf16 %v2843_v9 }
 0x1c1   : > { %v2838_v3 = vpop.permute.xlu0 %2837 }
 0x1c2   : > { %v2840_v39 = vunpack.i.h.bf16 %v2838_v3  ;;  %v2839_v15 = vunpack.i.l.bf16 %v2838_v3  ;;  %v1512_v0 = vsel %vm1491_vm9, %v1479_v16, %v2844_v6  ;;  %v1513_v24 = vsel %vm1491_vm9, %v1480_v54, %v2845_v13 }
 0x1c4   : > { %v1485_v34 = vsel %vm1458_vm8, %v4211_v55, %v2839_v15  ;;  %v1486_v20 = vsel %vm1458_vm8, %v4214_v17, %v2840_v39 }
 0x1c5   : > { %v1518_v22 = vsel %vm1491_vm9, %v1485_v34, %v2849_v35  ;;  %v1519_v63 = vsel %vm1491_vm9, %v1486_v20, %v2850_v60  ;;  %v1482_v60 = vsel %vm1458_vm8, %v4304_v31, %v2880_v40 }
 0x1c6   : > { %v2908_v5 = vpop.permute.xlu2 %2907 }
 0x1c7   : > { %v2858_v59 = vpop.permute.xlu1 %2857  ;;  %v2910_v54 = vunpack.i.h.bf16 %v2908_v5 }
 0x1c8   : > { %v2860_v53 = vunpack.i.h.bf16 %v2858_v59  ;;  %v2859_v7 = vunpack.i.l.bf16 %v2858_v59 }
 0x1c9   : > { %v2853_v11 = vpop.permute.xlu0 %2852 }
 0x1ca   : > { %v2855_v55 = vunpack.i.h.bf16 %v2853_v11  ;;  %v2854_v56 = vunpack.i.l.bf16 %v2853_v11  ;;  %v1551_v17 = vsel %vm1524_vm10, %v1518_v22, %v2859_v7  ;;  %v1552_v46 = vsel %vm1524_vm10, %v1519_v63, %v2860_v53 }
 0x1cb   : > { %v1570_v52 = vpack.c.bf16 %v1552_v46, %v1551_v17  ;;  %v2909_v11 = vunpack.i.l.bf16 %v2908_v5 }
 0x1cc   : > { %v1545_v30 = vsel %vm1524_vm10, %v1512_v0, %v2854_v56  ;;  %v1546_v61 = vsel %vm1524_vm10, %v1513_v24, %v2855_v55  ;;  %v1490_v24 = vsel %vm1458_vm8, %v4318_v21, %v2910_v54 }
 0x1cd   : > { %v1567_v48 = vpack.c.bf16 %v1546_v61, %v1545_v30  ;;  %2066 = vmatmul.msk.bf16.gmra.mxu3 %vm1593_vm11, %v1570_v52  ;;  %v1489_v0 = vsel %vm1458_vm8, %v4314_v41, %v2909_v11 }
 0x1cf   : > { %2063 = vmatmul.msk.bf16.gmra.mxu2 %vm1593_vm11, %v1567_v48  ;;  %v2873_v23 = vpop.permute.xlu1 %2872 }
 0x1d0   : > { %v2875_v14 = vunpack.i.h.bf16 %v2873_v23  ;;  %v2874_v25 = vunpack.i.l.bf16 %v2873_v23 }
 0x1d1   : > { %v2868_v4 = vpop.permute.xlu0 %2867 }
 0x1d2   : > { %v2870_v49 = vunpack.i.h.bf16 %v2868_v4  ;;  %v2869_v8 = vunpack.i.l.bf16 %v2868_v4 }
 0x1d4   : > { %v1506_v1 = vsel %vm1491_vm9, %v1473_v62, %v2869_v8  ;;  %v1507_v37 = vsel %vm1491_vm9, %v1474_v27, %v2870_v49 }
 0x1d5   : > { %v1539_v26 = vsel %vm1524_vm10, %v1506_v1, %v2874_v25  ;;  %v1540_v12 = vsel %vm1524_vm10, %v1507_v37, %v2875_v14 }
 0x1d6   : > { %v1564_v42 = vpack.c.bf16 %v1540_v12, %v1539_v26 }
 0x1d7   : > { %v2888_v47 = vpop.permute.xlu1 %2887 }
 0x1d8   : > { %2060 = vmatmul.msk.bf16.gmra.mxu1 %vm1593_vm11, %v1564_v42  ;;  %v2890_v9 = vunpack.i.h.bf16 %v2888_v47  ;;  %v2889_v3 = vunpack.i.l.bf16 %v2888_v47 }
 0x1d9   : > { %v2883_v45 = vpop.permute.xlu0 %2882 }
 0x1da   : > { %v2885_v19 = vunpack.i.h.bf16 %v2883_v45  ;;  %v2884_v10 = vunpack.i.l.bf16 %v2883_v45  ;;  %v1514_v6 = vsel %vm1491_vm9, %v1481_v44, %v2889_v3  ;;  %v1515_v59 = vsel %vm1491_vm9, %v1482_v60, %v2890_v9 }
 0x1dc   : > { %v1487_v18 = vsel %vm1458_vm8, %v4325_v38, %v2884_v10  ;;  %v1488_v36 = vsel %vm1458_vm8, %v4329_v32, %v2885_v19 }
 0x1dd   : > { %v1520_v57 = vsel %vm1491_vm9, %v1487_v18, %v2894_v29  ;;  %v1521_v34 = vsel %vm1491_vm9, %v1488_v36, %v2895_v2 }
 0x1df   : > { %v2903_v39 = vpop.permute.xlu1 %2902 }
 0x1e0   : > { %v2905_v15 = vunpack.i.h.bf16 %v2903_v39  ;;  %v2904_v43 = vunpack.i.l.bf16 %v2903_v39 }
 0x1e1   : > { %v2898_v35 = vpop.permute.xlu0 %2897 }
 0x1e2   : > { %v2900_v38 = vunpack.i.h.bf16 %v2898_v35  ;;  %v2899_v20 = vunpack.i.l.bf16 %v2898_v35  ;;  %v1553_v32 = vsel %vm1524_vm10, %v1520_v57, %v2904_v43  ;;  %v1554_v13 = vsel %vm1524_vm10, %v1521_v34, %v2905_v15 }
 0x1e3   : > { %v1571_v53 = vpack.c.bf16 %v1554_v13, %v1553_v32 }
 0x1e4   : > { %v1547_v7 = vsel %vm1524_vm10, %v1514_v6, %v2899_v20  ;;  %v1548_v31 = vsel %vm1524_vm10, %v1515_v59, %v2900_v38 }
 0x1e5   : > { %v1568_v16 = vpack.c.bf16 %v1548_v31, %v1547_v7  ;;  %2067 = vmatmul.msk.bf16.gmra.mxu3 %vm1593_vm11, %v1571_v53 }
 0x1e7   : > { %2064 = vmatmul.msk.bf16.gmra.mxu2 %vm1593_vm11, %v1568_v16  ;;  %v2918_v22 = vpop.permute.xlu1 %2917 }
 0x1e8   : > { %v2920_v55 = vunpack.i.h.bf16 %v2918_v22  ;;  %v2919_v56 = vunpack.i.l.bf16 %v2918_v22 }
 0x1e9   : > { %v2913_v63 = vpop.permute.xlu0 %2912 }
 0x1ea   : > { %v2915_v17 = vunpack.i.h.bf16 %v2913_v63  ;;  %v2914_v46 = vunpack.i.l.bf16 %v2913_v63 }
 0x1ec   : > { %v1522_v52 = vsel %vm1491_vm9, %v1489_v0, %v2914_v46  ;;  %v1523_v30 = vsel %vm1491_vm9, %v1490_v24, %v2915_v17 }
 0x1ed   : > { %v1555_v61 = vsel %vm1524_vm10, %v1522_v52, %v2919_v56  ;;  %v1556_v48 = vsel %vm1524_vm10, %v1523_v30, %v2920_v55 }
 0x1ee   : > { %v1572_v51 = vpack.c.bf16 %v1556_v48, %v1555_v61 }
 0x1f5   : > { %v1655_v28 = vpop.f32.mrf.mxu0  ;;  %2068 = vmatmul.msk.bf16.gmra.mxu3 %vm1593_vm11, %v1572_v51 }
 0x1f6   : > { %v1836_v23 = vmul.f32 %v1655_v28, %v1655_v28 }
 0x1fd   : > { %v1657_v41 = vpop.f32.mrf.mxu0 }
 0x1fe   : > { %v2118_v50 = vpack.c.bf16 %v1657_v41, %v1655_v28  ;;  %v1799_v21 = vadd.f32 %v1657_v41, %v1655_v28  ;;  %v1837_v14 = vmul.f32 %v1657_v41, %v1657_v41 }
 0x200   : > { %2119 = vst [vmem:[%s4525_s27] sm:$0xff] %v2118_v50   ;;  %v1868_v25 = vadd.f32 %v1837_v14, %v1836_v23 }
 0x202   : > { %v1675_v4 = vpop.f32.mrf.mxu1 }
 0x203   : > { %v1844_v22 = vmul.f32 %v1675_v4, %v1675_v4 }
 0x205   : > { %v1660_v49 = vpop.f32.mrf.mxu0 }
 0x206   : > { %v1800_v8 = vadd.f32 %v1799_v21, %v1660_v49  ;;  %v1838_v62 = vmul.f32 %v1660_v49, %v1660_v49 }
 0x208   : > { %v1869_v27 = vadd.f32 %v1868_v25, %v1838_v62 }
 0x20a   : > { %v1677_v1 = vpop.f32.mrf.mxu1 }
 0x20b   : > { %v2138_v37 = vpack.c.bf16 %v1677_v1, %v1675_v4  ;;  %v1845_v56 = vmul.f32 %v1677_v1, %v1677_v1 }
 0x20d   : > { %2206 = vst [vmem:[%s4525_s27 + $0x20] sm:$0xff] %v2138_v37   ;;  %v1662_v26 = vpop.f32.mrf.mxu0 }
 0x20e   : > { %v2123_v12 = vpack.c.bf16 %v1662_v26, %v1660_v49  ;;  %v1839_v15 = vmul.f32 %v1662_v26, %v1662_v26  ;;  %v1801_v60 = vadd.f32 %v1800_v8, %v1662_v26 }
 0x210   : > { %2203 = vst [vmem:[%s4525_s27 + $0x8] sm:$0xff] %v2123_v12   ;;  %v1870_v57 = vadd.f32 %v1869_v27, %v1839_v15 }
 0x213   : > { %v4530_v42 = vpop.f32.mrf.mxu2 }
 0x21a   : > { %v1680_v47 = vpop.f32.mrf.mxu1 }
 0x21b   : > { %v4532_v45 = vpop.f32.mrf.mxu2  ;;  %v1846_v52 = vmul.f32 %v1680_v47, %v1680_v47 }
 0x21c   : > { %v2158_v58 = vpack.c.bf16 %v4532_v45, %v4530_v42  ;;  %v1665_v19 = vpop.f32.mrf.mxu0 }
 0x21d   : > { %v1840_v35 = vmul.f32 %v1665_v19, %v1665_v19  ;;  %v1802_v34 = vadd.f32 %v1801_v60, %v1665_v19 }
 0x21e   : > { %2210 = vst [vmem:[%s4525_s27 + $0x40] sm:$0xff] %v2158_v58  }
 0x21f   : > { %v1871_v20 = vadd.f32 %v1870_v57, %v1840_v35 }
 0x222   : > { %v1682_v10 = vpop.f32.mrf.mxu1 }
 0x223   : > { %v2143_v40 = vpack.c.bf16 %v1682_v10, %v1680_v47  ;;  %v1847_v48 = vmul.f32 %v1682_v10, %v1682_v10 }
 0x224   : > { %v1667_v33 = vpop.f32.mrf.mxu0 }
 0x225   : > { %v2128_v2 = vpack.c.bf16 %v1667_v33, %v1665_v19  ;;  %2207 = vst [vmem:[%s4525_s27 + $0x28] sm:$0xff] %v2143_v40   ;;  %v1841_v38 = vmul.f32 %v1667_v33, %v1667_v33  ;;  %v1803_v32 = vadd.f32 %v1802_v34, %v1667_v33  ;;  %v1852_v40 = vmul.f32 %v4530_v42, %v4530_v42 }
 0x227   : > { %2204 = vst [vmem:[%s4525_s27 + $0x10] sm:$0xff] %v2128_v2   ;;  %v1872_v59 = vadd.f32 %v1871_v20, %v1841_v38 }
 0x230   : > { %v4539_v29 = vpop.f32.mrf.mxu3 }
 0x232   : > { %v4541_v18 = vpop.f32.mrf.mxu2 }
 0x238   : > { %v4543_v36 = vpop.f32.mrf.mxu3 }
 0x239   : > { %v2178_v9 = vpack.c.bf16 %v4543_v36, %v4539_v29 }
 0x23a   : > { %v4547_v3 = vpop.f32.mrf.mxu2  ;;  %v1685_v39 = vpop.f32.mrf.mxu1 }
 0x23b   : > { %v2163_v43 = vpack.c.bf16 %v4547_v3, %v4541_v18  ;;  %2214 = vst [vmem:[%s4525_s27 + $0x60] sm:$0xff] %v2178_v9   ;;  %v1848_v50 = vmul.f32 %v1685_v39, %v1685_v39  ;;  %v1853_v9 = vmul.f32 %v4532_v45, %v4532_v45  ;;  %v1855_v35 = vmul.f32 %v4547_v3, %v4547_v3 }
 0x23c   : > { %v1670_v44 = vpop.f32.mrf.mxu0 }
 0x23d   : > { %2211 = vst [vmem:[%s4525_s27 + $0x48] sm:$0xff] %v2163_v43   ;;  %v1842_v13 = vmul.f32 %v1670_v44, %v1670_v44  ;;  %v1804_v53 = vadd.f32 %v1803_v32, %v1670_v44  ;;  %v1854_v43 = vmul.f32 %v4541_v18, %v4541_v18 }
 0x23f   : > { %v1873_v31 = vadd.f32 %v1872_v59, %v1842_v13 }
 0x242   : > { %v1687_v6 = vpop.f32.mrf.mxu1 }
 0x243   : > { %v2148_v5 = vpack.c.bf16 %v1687_v6, %v1685_v39  ;;  %v1849_v8 = vmul.f32 %v1687_v6, %v1687_v6 }
 0x244   : > { %v1672_v7 = vpop.f32.mrf.mxu0 }
 0x245   : > { %v2133_v16 = vpack.c.bf16 %v1672_v7, %v1670_v44  ;;  %v1805_v54 = vadd.f32 %v1804_v53, %v1672_v7  ;;  %v1843_v11 = vmul.f32 %v1672_v7, %v1672_v7  ;;  %2208 = vst [vmem:[%s4525_s27 + $0x30] sm:$0xff] %v2148_v5  }
 0x247   : > { %2205 = vst [vmem:[%s4525_s27 + $0x18] sm:$0xff] %v2133_v16   ;;  %v1806_v63 = vadd.f32 %v1805_v54, %v1675_v4  ;;  %v1874_v55 = vadd.f32 %v1873_v31, %v1843_v11 }
 0x249   : > { %v1807_v17 = vadd.f32 %v1806_v63, %v1677_v1  ;;  %v1875_v46 = vadd.f32 %v1874_v55, %v1844_v22  ;;  %v1860_v63 = vmul.f32 %v4539_v29, %v4539_v29 }
 0x24b   : > { %v1808_v0 = vadd.f32 %v1807_v17, %v1680_v47  ;;  %v1876_v24 = vadd.f32 %v1875_v46, %v1845_v56  ;;  %v1861_v17 = vmul.f32 %v4543_v36, %v4543_v36 }
 0x24d   : > { %v1877_v30 = vadd.f32 %v1876_v24, %v1846_v52  ;;  %v1809_v51 = vadd.f32 %v1808_v0, %v1682_v10 }
 0x24f   : > { %v1878_v41 = vadd.f32 %v1877_v30, %v1847_v48  ;;  %v1810_v21 = vadd.f32 %v1809_v51, %v1685_v39 }
 0x250   : > { %v4555_v61 = vpop.f32.mrf.mxu3 }
 0x251   : > { %v1879_v14 = vadd.f32 %v1878_v41, %v1848_v50  ;;  %v1811_v49 = vadd.f32 %v1810_v21, %v1687_v6  ;;  %v1862_v52 = vmul.f32 %v4555_v61, %v4555_v61 }
 0x252   : > { %v1705_v28 = vpop.f32.mrf.mxu2 }
 0x253   : > { %v1880_v37 = vadd.f32 %v1879_v14, %v1849_v8  ;;  %v1856_v20 = vmul.f32 %v1705_v28, %v1705_v28 }
 0x255   : > { %v1690_v23 = vpop.f32.mrf.mxu1 }
 0x256   : > { %v1850_v62 = vmul.f32 %v1690_v23, %v1690_v23  ;;  %v1812_v26 = vadd.f32 %v1811_v49, %v1690_v23 }
 0x258   : > { %v1722_v25 = vpop.f32.mrf.mxu3  ;;  %v1881_v47 = vadd.f32 %v1880_v37, %v1850_v62 }
 0x259   : > { %v2183_v4 = vpack.c.bf16 %v1722_v25, %v4555_v61  ;;  %v1863_v51 = vmul.f32 %v1722_v25, %v1722_v25 }
 0x25a   : > { %v1707_v27 = vpop.f32.mrf.mxu2 }
 0x25b   : > { %v2168_v1 = vpack.c.bf16 %v1707_v27, %v1705_v28  ;;  %2215 = vst [vmem:[%s4525_s27 + $0x68] sm:$0xff] %v2183_v4   ;;  %v1857_v6 = vmul.f32 %v1707_v27, %v1707_v27 }
 0x25d   : > { %2212 = vst [vmem:[%s4525_s27 + $0x50] sm:$0xff] %v2168_v1   ;;  %v1692_v12 = vpop.f32.mrf.mxu1 }
 0x25e   : > { %v2153_v58 = vpack.c.bf16 %v1692_v12, %v1690_v23  ;;  %v1813_v19 = vadd.f32 %v1812_v26, %v1692_v12  ;;  %v1851_v10 = vmul.f32 %v1692_v12, %v1692_v12 }
 0x260   : > { %2209 = vst [vmem:[%s4525_s27 + $0x38] sm:$0xff] %v2153_v58   ;;  %v1814_v33 = vadd.f32 %v1813_v19, %v4530_v42  ;;  %v1882_v2 = vadd.f32 %v1881_v47, %v1851_v10 }
 0x262   : > { %v1815_v39 = vadd.f32 %v1814_v33, %v4532_v45  ;;  %v1883_v15 = vadd.f32 %v1882_v2, %v1852_v40 }
 0x264   : > { %v1816_v44 = vadd.f32 %v1815_v39, %v4541_v18  ;;  %v1884_v60 = vadd.f32 %v1883_v15, %v1853_v9 }
 0x266   : > { %v1885_v57 = vadd.f32 %v1884_v60, %v1854_v43  ;;  %v1817_v34 = vadd.f32 %v1816_v44, %v4547_v3 }
 0x268   : > { %v1886_v42 = vadd.f32 %v1885_v57, %v1855_v35  ;;  %v1725_v38 = vpop.f32.mrf.mxu3  ;;  %v1818_v32 = vadd.f32 %v1817_v34, %v1705_v28 }
 0x26a   : > { %v1710_v13 = vpop.f32.mrf.mxu2  ;;  %v1887_v45 = vadd.f32 %v1886_v42, %v1856_v20  ;;  %v1819_v59 = vadd.f32 %v1818_v32, %v1707_v27 }
 0x26b   : > { %v1858_v53 = vmul.f32 %v1710_v13, %v1710_v13 }
 0x26c   : > { %v1888_v5 = vadd.f32 %v1887_v45, %v1857_v6  ;;  %v1820_v7 = vadd.f32 %v1819_v59, %v1710_v13 }
 0x26e   : > { %v1889_v54 = vadd.f32 %v1888_v5, %v1858_v53 }
 0x270   : > { %v1727_v18 = vpop.f32.mrf.mxu3 }
 0x271   : > { %v2188_v31 = vpack.c.bf16 %v1727_v18, %v1725_v38  ;;  %v1865_v21 = vmul.f32 %v1727_v18, %v1727_v18 }
 0x272   : > { %v1712_v16 = vpop.f32.mrf.mxu2 }
 0x273   : > { %v2173_v11 = vpack.c.bf16 %v1712_v16, %v1710_v13  ;;  %v1821_v3 = vadd.f32 %v1820_v7, %v1712_v16  ;;  %v1859_v22 = vmul.f32 %v1712_v16, %v1712_v16  ;;  %2216 = vst [vmem:[%s4525_s27 + $0x70] sm:$0xff] %v2188_v31  }
 0x275   : > { %2213 = vst [vmem:[%s4525_s27 + $0x58] sm:$0xff] %v2173_v11   ;;  %v1822_v55 = vadd.f32 %v1821_v3, %v4539_v29  ;;  %v1890_v56 = vadd.f32 %v1889_v54, %v1859_v22  ;;  %v1864_v29 = vmul.f32 %v1725_v38, %v1725_v38 }
 0x277   : > { %v1823_v46 = vadd.f32 %v1822_v55, %v4543_v36  ;;  %v1891_v0 = vadd.f32 %v1890_v56, %v1860_v63 }
 0x278   : > { %v1730_v24 = vpop.f32.mrf.mxu3 }
 0x279   : > { %v1824_v30 = vadd.f32 %v1823_v46, %v4555_v61  ;;  %v1892_v48 = vadd.f32 %v1891_v0, %v1861_v17  ;;  %v1866_v4 = vmul.f32 %v1730_v24, %v1730_v24 }
 0x27b   : > { %v1893_v28 = vadd.f32 %v1892_v48, %v1862_v52  ;;  %v1825_v41 = vadd.f32 %v1824_v30, %v1722_v25 }
 0x27d   : > { %v1826_v23 = vadd.f32 %v1825_v41, %v1725_v38  ;;  %v1894_v36 = vadd.f32 %v1893_v28, %v1863_v51 }
 0x27f   : > { %v1827_v50 = vadd.f32 %v1826_v23, %v1727_v18  ;;  %v1895_v14 = vadd.f32 %v1894_v36, %v1864_v29 }
 0x280   : > { %v1732_v61 = vpop.f32.mrf.mxu3 }
 0x281   : > { %v1896_v49 = vadd.f32 %v1895_v14, %v1865_v21  ;;  %v1828_v25 = vadd.f32 %v1827_v50, %v1730_v24  ;;  %v2193_v8 = vpack.c.bf16 %v1732_v61, %v1730_v24  ;;  %v1867_v62 = vmul.f32 %v1732_v61, %v1732_v61 }
 0x283   : > { %v1897_v27 = vadd.f32 %v1896_v49, %v1866_v4  ;;  %2217 = vst [vmem:[%s4525_s27 + $0x78] sm:$0xff] %v2193_v8   ;;  %v1829_v1 = vadd.f32 %v1828_v25, %v1732_v61 }
 0x284   : > { %2948 = shalt.err (!%p2945_p3)
}
 0x285   : > { %s3025_s26 = smov 64   ;;  %v1830_v37 = vrot.slane %v1829_v1, 4  ;;  %v1898_v26 = vadd.f32 %v1897_v27, %v1867_v62  ;;  %s2043_s27 = sshll.u32 %s4522_s25, 1  ;;  %vm1905_vm12 = vcmask 1040384  }
 0x286   : > { %2228 = dma.vmem_to_hbm [thread:$0]  (%p3084_p5), %s1927_s6, 2048, %s1929_s7, %s1909_s8, %s3025_s26, %s3025_s26, %s3017_s29  }
 0x287   : > { %v1831_v12 = vadd.f32 %v1830_v37, %v1829_v1  ;;  %v1899_v47 = vrot.slane %v1898_v26, 4  ;;  %s2073_s28 = sshll.u32 %s3067_s16, 1  ;;  %s174_s29 = scalar_lea.vmem [#allocation4], %s2043_s27 }
 0x288   : > { %s1941_s5 = scalar_lea.hbm %s4638_s3, %s2073_s28  ;;  %s1943_s6 = sshll.u32 %s174_s29, 4  ;;  %s1944_s6 = int_to_ptr.vmem [resolvable:$true] %s1943_s6 }
 0x289   : > { %v1832_v58 = vrot.slane %v1831_v12, 2  ;;  %v1900_v19 = vadd.f32 %v1899_v47, %v1898_v26  ;;  %s1945_s7 = sshll.u32 %s1941_s5, 4  ;;  %s1914_s16 = scalar_lea.sflag [#allocation5], %s4522_s25  ;;  %s1946_s7 = int_to_ptr.hbm [resolvable:$true] %s1945_s7 }
 0x28a   : > { %s2963_s8 = sshra.s32 %s1946_s7, 4  ;;  %s2969_s17 = scalar_lea.hbm %s4638_s3, 4  ;;  %s2964_s8 = int_to_ptr.hbm [resolvable:$true] %s2963_s8 }
 0x28b   : > { %v1833_v10 = vadd.f32 %v1832_v58, %v1831_v12  ;;  %v1901_v40 = vrot.slane %v1900_v19, 2  ;;  %s2965_s9 = scalar_lea.hbm %s2964_s8, 2  ;;  %p2970_p9 = scmp.lt.s32.totalorder %s2964_s8, %s4638_s3 }
 0x28c   : > { %p2966_p4 = scmp.ne.s32.totalorder %s2964_s8, %s2965_s9  ;;  %p2971_p10 = scmp.lt.s32.totalorder %s2969_s17, %s2965_s9 }
 0x28d   : > { %v1834_v33 = vrot.slane %v1833_v10, 1  ;;  %v1902_v2 = vadd.f32 %v1901_v40, %v1900_v19 }
 0x28e   : > { %p2967_p7 = pnand %p2966_p4, %p3084_p5  ;;  %p2972_p11 = por %p2971_p10, %p2970_p9 }
 0x28f   : > { %v1903_v9 = vrot.slane %v1902_v2, 1  ;;  %v1835_v39 = vadd.f32 %v1834_v33, %v1833_v10 }
 0x290   : > { %p2968_p8 = pneg %p2967_p7 }
 0x291   : > { %v1904_v15 = vadd.f32 %v1903_v9, %v1902_v2 }
 0x292   : > { %p2973_p12 = pnand %p2972_p11, %p2968_p8 }
 0x293   : > { %v1906_v43 = vsel %vm1905_vm12, %v1835_v39, %v1904_v15 }
 0x294   : > { %1907 = vst [vmem:[%s174_s29] sm:$0x3] %v1906_v43 }
 0x295   : > { %2976 = shalt.err (!%p2973_p12)
}
 0x296   : > { %2229 = dma.vmem_to_hbm [thread:$0]  (%p3084_p5), %s1944_s6, 32, %s1946_s7, %s1914_s16  }
 0x297 PF: > { %p2239_p13 = scmp.ge.s32.totalorder %s3015_s15, 2  ;;  %s1957_s25 = sand.u32 1, %s3003_s12  }
 0x298   : > { %s1958_s24 = scalar_lea.sflag [#allocation3], %s1957_s25 }
 0x299   : > { %p2233_p0 = pnand %p2239_p13, %p3088_p6 }
 0x29b   : > { %p2234_p1 = pneg %p2233_p0 }
 0x29d   : > { %2994 = dma.done.wait (%p2234_p1), %s1958_s24, 2048  }
 0x29e   : > { %2996 = vsyncadd (%p2234_p1), %s1958_s24, 4294965248  ;;  %s1968_s26 = scalar_lea.sflag [#allocation5], %s1957_s25 }
 0x29f   : > { %2998 = dma.done.wait (%p2234_p1), %s1968_s26, 32  }
 0x2a0   : > { %3000 = vsyncadd (%p2234_p1), %s1968_s26, 4294967264  ;;  %p17_p5 = scmp.ge.s32.totalorder %s3071_s18, 4   ;;  %s4834_s12 = smov %s3007_s13 }
 0x2a1   : > { %s4835_s13 = smov %s3011_s14  ;;  %s4836_s14 = smov %s3082_s21 }
 0x2a2   : > { %s4837_s15 = smov %s3071_s18  ;;  %19 = sbr.rel (!%p17_p5) target bundleno = 5 (0x5), region = 80 }
 0x2a7   :  { %1974 = vsyncpa [#allocation3], 1 }
 0x2a8   :  { %1976 = vsyncpa [#allocation3 + $0x1], 1 }
 0x2a9   :  { %1977 = vsyncpa [#allocation5], 1 }
 0x2aa   :  { %1979 = vsyncpa [#allocation5 + $0x1], 1 }

</bundles_post_ra>
